<compile_context>
chip_gen: v6e
topology: v6e:2x2x1
jax: 0.10.0
libtpu: 0.0.40
codegen_flags: <defaults>
</compile_context>

<pallas_src>
import functools

import jax
import jax.numpy as jnp
import numpy as np
from jax.experimental import pallas as pl
from jax.experimental.pallas import tpu as pltpu

EPS = 1e-5          # nn.LayerNorm default eps (Fp32LayerNorm keeps the default)
BF16 = jnp.bfloat16


# ----------------------------------------------------------------------------
# In-kernel helpers
# ----------------------------------------------------------------------------
def _layernorm_fp32(v):
    # Fp32LayerNorm(bias=False, elementwise_affine=False): plain LN in fp32.
    mu = jnp.mean(v, axis=-1, keepdims=True)
    var = jnp.mean(jnp.square(v - mu), axis=-1, keepdims=True)
    return (v - mu) * jax.lax.rsqrt(var + EPS)


def _modulate(v, shift, scale):
    return v * (1.0 + scale) + shift


def _mha(q, k, v, num_heads, head_dim, scale):
    """Head-batched attention. q: (Nq, D) f32, k/v: (Nk, D) f32.

    Heads are contiguous head_dim chunks of the last dim (PyTorch
    reshape(B, N, H, hd) convention). All heads go through single batched
    dot_generals (no per-head slicing, no explicit k transpose); MXU operands
    are bf16 with fp32 accumulation, softmax math stays fp32.
    """
    nq, d = q.shape
    nk = k.shape[0]
    qh = q.astype(BF16).reshape(nq, num_heads, head_dim)
    kh = k.astype(BF16).reshape(nk, num_heads, head_dim)
    vh = v.astype(BF16).reshape(nk, num_heads, head_dim)
    s = jnp.einsum("qhd,khd->hqk", qh, kh,
                   preferred_element_type=jnp.float32) * scale
    s = s - jnp.max(s, axis=-1, keepdims=True)
    p = jnp.exp(s)
    # denominator via EUP approximate reciprocal (off the VALU slot).
    p = p * pl.reciprocal(jnp.sum(p, axis=-1, keepdims=True), approx=True)
    o = jnp.einsum("hqk,khd->qhd", p.astype(BF16), vh,
                   preferred_element_type=jnp.float32)
    return o.reshape(nq, d)


# ----------------------------------------------------------------------------
# Kernels
# ----------------------------------------------------------------------------
def adaln_modulation_kernel(emb_ref, w_ref, b_ref, out_ref):
    # nn.Sequential(nn.SiLU(), nn.Linear(D, 11*D, bias=True)), fp32.
    e = emb_ref[0].astype(jnp.float32)                      # (N_emb, D)
    h = e * jax.nn.sigmoid(e)                               # SiLU
    y = jnp.dot(h, w_ref[...], preferred_element_type=jnp.float32)
    out_ref[0] = (y + b_ref[...]).astype(out_ref.dtype)


def flex_decoder_block_adaln_kernel(
    x_ref, ctx_ref, mod_ref,
    wq_sa_ref, wk_sa_ref, wv_sa_ref, w_sa_proj_ref,
    wq_xa_ref, wk_xa_ref, wv_xa_ref, w_xa_proj_ref,
    w_mlp1_ref, w_mlp2_ref,
    out_ref,
    *, num_heads, head_dim, scale,
):
    # TODO(synk): sa/xa score_mod, block_mask and rope_forward are None in
    # this setup; flex-attention score-mod hooks are not translated.
    D = num_heads * head_dim
    x = x_ref[0].astype(jnp.float32)        # (N, D)
    ctx = ctx_ref[0].astype(jnp.float32)    # (M, D)
    mod = mod_ref[0].astype(jnp.float32)    # (N, 11*D)

    # chunk(11, dim=-1); offsets are multiples of D (lane-aligned for D%128==0)
    c = lambda i: mod[:, i * D:(i + 1) * D]
    gate_msa, gate_mxa, gate_mlp = c(0), c(1), c(2)
    shift_msa, scale_msa = c(3), c(4)
    shift_xq, scale_xq = c(5), c(6)
    shift_xc, scale_xc = c(7), c(8)
    shift_mlp, scale_mlp = c(9), c(10)

    # ---- x = x + gate_msa * self_attn(modulate(norm1(x), shift, scale)) ----
    h1 = _modulate(_layernorm_fp32(x), shift_msa, scale_msa).astype(BF16)
    q = jnp.dot(h1, wq_sa_ref[...], preferred_element_type=jnp.float32)
    k = jnp.dot(h1, wk_sa_ref[...], preferred_element_type=jnp.float32)
    v = jnp.dot(h1, wv_sa_ref[...], preferred_element_type=jnp.float32)
    sa = _mha(q, k, v, num_heads, head_dim, scale)
    sa = jnp.dot(sa.astype(BF16), w_sa_proj_ref[...],
                 preferred_element_type=jnp.float32)
    x = x + gate_msa * sa

    # ---- x = x + gate_mxa * cross_attn(mod(query_norm(x)), mod(ctx_norm)) --
    qn = _modulate(_layernorm_fp32(x), shift_xq, scale_xq).astype(BF16)
    cn = _modulate(_layernorm_fp32(ctx), shift_xc, scale_xc).astype(BF16)
    q = jnp.dot(qn, wq_xa_ref[...], preferred_element_type=jnp.float32)
    k = jnp.dot(cn, wk_xa_ref[...], preferred_element_type=jnp.float32)
    v = jnp.dot(cn, wv_xa_ref[...], preferred_element_type=jnp.float32)
    xa = _mha(q, k, v, num_heads, head_dim, scale)
    xa = jnp.dot(xa.astype(BF16), w_xa_proj_ref[...],
                 preferred_element_type=jnp.float32)
    x = x + gate_mxa * xa

    # ---- x = x + gate_mlp * mlp(modulate(norm2(x), shift, scale)) ----------
    h2 = _modulate(_layernorm_fp32(x), shift_mlp, scale_mlp).astype(BF16)
    hid = jnp.dot(h2, w_mlp1_ref[...], preferred_element_type=jnp.float32)
    hid = jax.nn.gelu(hid, approximate=False).astype(BF16)  # exact erf GELU
    mlp_out = jnp.dot(hid, w_mlp2_ref[...], preferred_element_type=jnp.float32)
    x = x + gate_mlp * mlp_out

    out_ref[0] = x.astype(out_ref.dtype)


# ----------------------------------------------------------------------------
# Wrappers
# ----------------------------------------------------------------------------
def _expand_to_padded_seq(emb, padded_seq):
    n_pad = padded_seq.shape[1] - emb.shape[1]
    if n_pad == 0:
        return emb
    return jnp.pad(emb, ((0, 0), (0, n_pad), (0, 0)))


def adaln_modulation(adaLN_emb, w_ada_t, b_ada):
    """SiLU -> Linear(D, 11D) as a small Pallas kernel, gridded over batch."""
    B, N_emb, D = adaLN_emb.shape
    out_dim = w_ada_t.shape[1]
    b2d = b_ada.reshape(1, out_dim)
    return pl.pallas_call(
        adaln_modulation_kernel,
        out_shape=jax.ShapeDtypeStruct((B, N_emb, out_dim), jnp.float32),
        grid=(B,),
        in_specs=[
            pl.BlockSpec((1, N_emb, D), lambda b: (b, 0, 0)),
            pl.BlockSpec((D, out_dim), lambda b: (0, 0)),
            pl.BlockSpec((1, out_dim), lambda b: (0, 0)),
        ],
        out_specs=pl.BlockSpec((1, N_emb, out_dim), lambda b: (b, 0, 0)),
        compiler_params=pltpu.CompilerParams(
            dimension_semantics=("parallel",)),
    )(adaLN_emb, w_ada_t, b2d)


def flex_decoder_block_adaln(x, context, adaLN_emb, params, num_heads):
    B, N, D = x.shape
    _, M, _ = context.shape
    # The module broadcasts (B, N, D) shift/scale against the normed context,
    # which (exactly like PyTorch broadcasting) requires M == N.
    assert M == N, "context modulation requires context seq len == x seq len"
    head_dim = D // num_heads
    scale = 1.0 / head_dim          # muP_scale=True -> 1/head_dim (not rsqrt)
    Hd = params["mlp_fc1"].shape[0]

    # ---- adaLN modulation path (SiLU + Linear in Pallas, then pad to N) ----
    mod = adaln_modulation(
        adaLN_emb,
        jnp.asarray(params["ada_w"]).T.astype(jnp.float32),   # (D, 11D)
        jnp.asarray(params["ada_b"]).astype(jnp.float32))
    # TODO(synk): adaLN_packing_fn is an arbitrary user callable; identity here.
    mod = _expand_to_padded_seq(mod, x)                        # (B, N, 11D)

    # ---- weights: PyTorch (out, in) -> (in, out), packed qkv/kv pre-split,
    #      cast to bf16 (MXU bf16 x bf16 -> f32; halves weight DMA + VMEM). ---
    cast = lambda w: jnp.asarray(w).T.astype(BF16)
    sa_qkv = params["sa_qkv"]                                  # (3D, D)
    wq_sa, wk_sa, wv_sa = (cast(sa_qkv[:D]), cast(sa_qkv[D:2 * D]),
                           cast(sa_qkv[2 * D:]))
    w_sa_proj = cast(params["sa_proj"])
    wq_xa = cast(params["xa_q"])
    xa_kv = params["xa_kv"]                                    # (2D, D)
    wk_xa, wv_xa = cast(xa_kv[:D]), cast(xa_kv[D:])
    w_xa_proj = cast(params["xa_proj"])
    w_mlp1 = cast(params["mlp_fc1"])                           # (D, Hd)
    w_mlp2 = cast(params["mlp_fc2"])                           # (Hd, D)

    weights = (wq_sa, wk_sa, wv_sa, w_sa_proj, wq_xa, wk_xa, wv_xa,
               w_xa_proj, w_mlp1, w_mlp2)

    # Scoped-VMEM budget: bf16 weights + f32 activation blocks, x2 for the
    # BlockSpec double buffers (weight index maps are constant across the
    # grid, so their blocks are only DMA'd once), plus compute headroom.
    weight_bytes = sum(int(np.prod(w.shape)) * 2 for w in weights)
    act_bytes = 4 * (N * D + M * D + N * 11 * D + N * D)
    vmem_limit = int(min(64 * 1024 * 1024,
                         max(32 * 1024 * 1024,
                             2 * (weight_bytes + act_bytes) + (8 << 20))))

    kernel = functools.partial(
        flex_decoder_block_adaln_kernel,
        num_heads=num_heads, head_dim=head_dim, scale=scale)

    def wspec(shape):
        return pl.BlockSpec(shape, lambda b: (0, 0))

    return pl.pallas_call(
        kernel,
        out_shape=jax.ShapeDtypeStruct((B, N, D), x.dtype),
        grid=(B,),
        in_specs=[
            pl.BlockSpec((1, N, D), lambda b: (b, 0, 0)),        # x
            pl.BlockSpec((1, M, D), lambda b: (b, 0, 0)),        # context
            pl.BlockSpec((1, N, 11 * D), lambda b: (b, 0, 0)),   # adaLN mod
            wspec((D, D)), wspec((D, D)), wspec((D, D)), wspec((D, D)),
            wspec((D, D)), wspec((D, D)), wspec((D, D)), wspec((D, D)),
            wspec((D, Hd)), wspec((Hd, D)),
        ],
        out_specs=pl.BlockSpec((1, N, D), lambda b: (b, 0, 0)),
        compiler_params=pltpu.CompilerParams(
            dimension_semantics=("parallel",),
            vmem_limit_bytes=vmem_limit),
    )(x, context, mod, *weights)


# ----------------------------------------------------------------------------
# Pure-JAX fp32 reference (module semantics) for verification
# ----------------------------------------------------------------------------
def flex_decoder_block_adaln_ref(x, context, adaLN_emb, params, num_heads):
    B, N, D = x.shape
    head_dim = D // num_heads
    scale = 1.0 / head_dim

    def ln(v):
        mu = jnp.mean(v, axis=-1, keepdims=True)
        var = jnp.mean(jnp.square(v - mu), axis=-1, keepdims=True)
        return (v - mu) * jax.lax.rsqrt(var + EPS)

    def mha(q, k, v):
        def split(t):
            b, n, _ = t.shape
            return t.reshape(b, n, num_heads, head_dim).transpose(0, 2, 1, 3)
        qh, kh, vh = split(q), split(k), split(v)
        s = jnp.einsum("bhqd,bhkd->bhqk", qh, kh,
                       preferred_element_type=jnp.float32) * scale
        p = jax.nn.softmax(s, axis=-1)
        o = jnp.einsum("bhqk,bhkd->bhqd", p, vh,
                       preferred_element_type=jnp.float32)
        return o.transpose(0, 2, 1, 3).reshape(q.shape)

    lin = lambda t, w: jnp.einsum("bnd,od->bno", t, w,
                                  preferred_element_type=jnp.float32)
    modd = lambda v, sh, sc: v * (1.0 + sc) + sh

    # adaLN_modulation + identity packing + pad to N
    mod = (jnp.einsum("bnd,od->bno", jax.nn.silu(adaLN_emb), params["ada_w"])
           + params["ada_b"])
    n_pad = N - mod.shape[1]
    if n_pad:
        mod = jnp.pad(mod, ((0, 0), (0, n_pad), (0, 0)))
    ch = [mod[..., i * D:(i + 1) * D] for i in range(11)]
    gate_msa, gate_mxa, gate_mlp = ch[0], ch[1], ch[2]
    (shift_msa, scale_msa, shift_xq, scale_xq,
     shift_xc, scale_xc, shift_mlp, scale_mlp) = ch[3:]

    # self-attn
    h1 = modd(ln(x), shift_msa, scale_msa)
    qkv = lin(h1, params["sa_qkv"])
    q, k, v = qkv[..., :D], qkv[..., D:2 * D], qkv[..., 2 * D:]
    x = x + gate_msa * lin(mha(q, k, v), params["sa_proj"])
    # cross-attn
    qn = modd(ln(x), shift_xq, scale_xq)
    cn = modd(ln(context), shift_xc, scale_xc)
    q = lin(qn, params["xa_q"])
    kv = lin(cn, params["xa_kv"])
    k, v = kv[..., :D], kv[..., D:]
    x = x + gate_mxa * lin(mha(q, k, v), params["xa_proj"])
    # mlp
    h2 = modd(ln(x), shift_mlp, scale_mlp)
    hid = jax.nn.gelu(lin(h2, params["mlp_fc1"]), approximate=False)
    x = x + gate_mlp * lin(hid, params["mlp_fc2"])
    return x


if __name__ == "__main__":
    # Lane-dense small shapes: D multiple of 128, head_dim = 128.
    B, N, M, D = 2, 16, 16, 256
    N_emb = 8                      # < N to exercise expand_to_padded_seq
    num_heads = 2
    mlp_hidden = int(D * 4.0)

    key = jax.random.PRNGKey(0)
    keys = jax.random.split(key, 12)

    # Deterministic synthetic parameters, PyTorch (out_features, in_features)
    # shapes; all linear biases disabled per module defaults.  The adaLN
    # Linear is zero-initialized in the module; random here so the modulation
    # path is actually exercised.
    params = {
        "sa_qkv":  0.02 * jax.random.normal(keys[0], (3 * D, D), jnp.float32),
        "sa_proj": 0.02 * jax.random.normal(keys[1], (D, D), jnp.float32),
        "xa_q":    0.02 * jax.random.normal(keys[2], (D, D), jnp.float32),
        "xa_kv":   0.02 * jax.random.normal(keys[3], (2 * D, D), jnp.float32),
        "xa_proj": 0.02 * jax.random.normal(keys[4], (D, D), jnp.float32),
        "mlp_fc1": 0.02 * jax.random.normal(keys[5], (mlp_hidden, D), jnp.float32),
        "mlp_fc2": 0.02 * jax.random.normal(keys[6], (D, mlp_hidden), jnp.float32),
        "ada_w":   0.02 * jax.random.normal(keys[7], (11 * D, D), jnp.float32),
        "ada_b":   0.02 * jax.random.normal(keys[8], (11 * D,), jnp.float32),
    }

    x = jax.random.normal(keys[9], (B, N, D), jnp.float32)
    context = jax.random.normal(keys[10], (B, M, D), jnp.float32)
    adaLN_emb = jax.random.normal(keys[11], (B, N_emb, D), jnp.float32)

    out = jax.block_until_ready(
        flex_decoder_block_adaln(x, context, adaLN_emb, params, num_heads))
    ref = jax.block_until_ready(
        flex_decoder_block_adaln_ref(x, context, adaLN_emb, params, num_heads))

    assert out.shape == (B, N, D), out.shape
    assert bool(jnp.all(jnp.isfinite(out)))
    np.testing.assert_allclose(np.asarray(out), np.asarray(ref),
                               rtol=2e-2, atol=2e-2)
    print("KERNEL_OK")
</pallas_src>

<mosaic_0001>
module attributes {stable_mosaic.version = 11 : i64} {
  func.func @adaln_modulation_kernel(%arg0: i32, %arg1: memref<1x8x256xf32, #tpu.memory_space<vmem>>, %arg2: memref<256x2816xf32, #tpu.memory_space<vmem>>, %arg3: memref<1x2816xf32, #tpu.memory_space<vmem>>, %arg4: memref<1x8x2816xf32, #tpu.memory_space<vmem>>) attributes {dimension_semantics = [#tpu.dimension_semantics<parallel>], iteration_bounds = array<i64: 2>, scalar_prefetch = 0 : i64, scratch_operands = 0 : i64, tpu.core_type = #tpu.core_type<tc>, window_params = [{transform_indices = @transform_0, window_bounds = array<i64: 1, 8, 256>}, {pipeline_mode = #tpu.pipeline_mode<synchronous>, transform_indices = @transform_1, window_bounds = array<i64: 256, 2816>}, {pipeline_mode = #tpu.pipeline_mode<synchronous>, transform_indices = @transform_2, window_bounds = array<i64: 1, 2816>}, {transform_indices = @transform_3, window_bounds = array<i64: 1, 8, 2816>}]} {
    %c0 = arith.constant 0 : index
    %c0_0 = arith.constant 0 : index
    %c0_1 = arith.constant 0 : index
    %0 = vector.load %arg1[%c0, %c0_0, %c0_1] : memref<1x8x256xf32, #tpu.memory_space<vmem>>, vector<1x8x256xf32>
    %1 = vector.shape_cast %0 : vector<1x8x256xf32> to vector<8x256xf32>
    %2 = arith.negf %1 : vector<8x256xf32>
    %3 = math.exp %2 : vector<8x256xf32>
    %cst = arith.constant 1.000000e+00 : f32
    %4 = vector.broadcast %cst : f32 to vector<8x256xf32>
    %5 = arith.addf %4, %3 : vector<8x256xf32>
    %6 = arith.divf %4, %5 : vector<8x256xf32>
    %7 = arith.mulf %1, %6 : vector<8x256xf32>
    %c0_2 = arith.constant 0 : index
    %c0_3 = arith.constant 0 : index
    %8 = vector.load %arg2[%c0_2, %c0_3] : memref<256x2816xf32, #tpu.memory_space<vmem>>, vector<256x2816xf32>
    %cst_4 = arith.constant dense<0.000000e+00> : vector<8x2816xf32>
    %9 = tpu.matmul %7, %8, %cst_4 {dimension_numbers = #tpu.dot_dimension_numbers<[1], [0], [0], [1], [0, 0, 1, 1], [], []>} : vector<8x256xf32>, vector<256x2816xf32>, vector<8x2816xf32> -> vector<8x2816xf32>
    %c0_5 = arith.constant 0 : index
    %c0_6 = arith.constant 0 : index
    %10 = vector.load %arg3[%c0_5, %c0_6] : memref<1x2816xf32, #tpu.memory_space<vmem>>, vector<1x2816xf32>
    %11 = vector.broadcast %10 : vector<1x2816xf32> to vector<8x2816xf32>
    %12 = arith.addf %9, %11 : vector<8x2816xf32>
    %c0_7 = arith.constant 0 : index
    %c0_8 = arith.constant 0 : index
    %c0_9 = arith.constant 0 : index
    %13 = vector.load %arg4[%c0_7, %c0_8, %c0_9] : memref<1x8x2816xf32, #tpu.memory_space<vmem>>, vector<1x8x2816xf32>
    %14 = vector.shape_cast %13 : vector<1x8x2816xf32> to vector<8x2816xf32>
    %15 = vector.shape_cast %12 : vector<8x2816xf32> to vector<1x8x2816xf32>
    tpu.vector_store %arg4[%c0_7, %c0_8, %c0_9], %15 {strides = array<i32>} : memref<1x8x2816xf32, #tpu.memory_space<vmem>>, vector<1x8x2816xf32>,
    return
  }
  func.func @transform_0(%arg0: i32) -> (i32, i32, i32) {
    %c0_i32 = arith.constant 0 : i32
    %c0_i32_0 = arith.constant 0 : i32
    %c0_i32_1 = arith.constant 0 : i32
    return %arg0, %c0_i32, %c0_i32_0 : i32, i32, i32
  }
  func.func @transform_1(%arg0: i32) -> (i32, i32) {
    %c0_i32 = arith.constant 0 : i32
    %c0_i32_0 = arith.constant 0 : i32
    %c0_i32_1 = arith.constant 0 : i32
    return %c0_i32, %c0_i32_0 : i32, i32
  }
  func.func @transform_2(%arg0: i32) -> (i32, i32) {
    %c0_i32 = arith.constant 0 : i32
    %c0_i32_0 = arith.constant 0 : i32
    %c0_i32_1 = arith.constant 0 : i32
    return %c0_i32, %c0_i32_0 : i32, i32
  }
  func.func @transform_3(%arg0: i32) -> (i32, i32, i32) {
    %c0_i32 = arith.constant 0 : i32
    %c0_i32_0 = arith.constant 0 : i32
    %c0_i32_1 = arith.constant 0 : i32
    return %arg0, %c0_i32, %c0_i32_0 : i32, i32, i32
  }
}

</mosaic_0001>

<bundles_post_ra>
// kernel: tpu_custom_call.1
= control target key start
LH: loop header
LB: loop body
LE: loop exit
PB: predicated region body
PF: predicated region fallthrough
CT: control target
= control target key end

     0   :  { %8 = vsyncpa [#allocation3], 0  ;;  %s2519_s0 = inlined_call_operand.hbm [shape: f32[2,8,256], index: 0, kind: input, shape index: {}]   ;;  %s2520_s1 = inlined_call_operand.hbm [shape: f32[256,2816], index: 1, kind: input, shape index: {}]   ;;  %s2521_s2 = inlined_call_operand.hbm [shape: f32[1,2816], index: 2, kind: input, shape index: {}]   ;;  %s2522_s3 = inlined_call_operand.hbm [shape: f32[2,8,2816], index: 3, kind: output, shape index: {}]  }
   0x1   :  { %10 = vsyncpa [#allocation3 + $0x1], 0 }
   0x2   :  { %11 = vsyncpa [#allocation6], 0 }
   0x3   :  { %12 = vsyncpa [#allocation4], 0 }
   0x4   :  { %14 = vsyncpa [#allocation4 + $0x1], 0  ;;  %s2230_s12 = smov 0   ;;  %s2232_s13 = smov 0  }
   0x5   :  { %s2234_s14 = smov 0   ;;  %s2236_s15 = smov 0  }
   0x6 LB: > { %s2251_s16 = sadd.s32 4294967295, %s2202_s15   ;;  %s1957_s17 = sadd.s32 4294967294, %s2202_s15   ;;  %s2202_s15 = sphi %s2236_s15, %s2544_s15   ;;  %s2198_s14 = sphi %s2234_s14, %s2543_s14   ;;  %s2194_s13 = sphi %s2232_s13, %s2542_s13   ;;  %s2190_s12 = sphi %s2230_s12, %s2541_s12  }
   0x7   : > { %p40_p0 = scmp.ne.s32.totalorder %s2194_s13, %s2190_s12  ;;  %p2523_p1 = scmp.eq.s32.totalorder %s2251_s16, 0 }
   0x8   : > { %p112_p3 = scmp.eq.s32.totalorder %s1957_s17, 1  ;;  %p1958_p5 = scmp.ge.s32.totalorder %s2202_s15, 1 }
   0x9   : > { %p2260_p4 = por %p2523_p1, %p40_p0  ;;  %p119_p7 = scmp.lt.s32.totalorder %s2202_s15, 3 }
   0xa   : > { %p2265_p6 = por %p112_p3, %p40_p0  ;;  %s2204_s21 = smov [#allocation5]  }
   0xb   : > { %s2527_s18 = scalar_select %p2260_p4, 1, 0 }
   0xc   : > { %s2528_s19 = scalar_select %p2265_p6, 1, 0 }
   0xd   : > { %p2270_p8 = pnand %p1958_p5, %p119_p7  ;;  %s131_s22 = sshll.u32 %s2204_s21, 4  ;;  %s132_s22 = int_to_ptr.vmem [resolvable:$true] %s131_s22 }
   0xe   : > { %s2205_s24 = smov [#allocation7]   ;;  %s2065_s26 = scalar_lea.vmem %s132_s22, 90112 }
   0xf   : > { %s2529_s20 = scalar_select %p2270_p8, 1, 0 }
  0x10   : > { %p1989_p9 = pneg %p2270_p8  ;;  %s145_s25 = sshll.u32 %s2205_s24, 4  ;;  %s146_s25 = int_to_ptr.vmem [resolvable:$true] %s145_s25 }
  0x11   : > { %p2066_p13 = scmp.ne.s32.totalorder %s132_s22, %s2065_s26  ;;  %p2073_p5 = scmp.lt.s32.totalorder %s132_s22, %s132_s22 }
  0x12   : > { %p2279_p11 = pnand %p1989_p9, %p2523_p1  ;;  %p2074_p7 = scmp.lt.s32.totalorder %s2065_s26, %s2065_s26 }
  0x14   : > { %p2056_p12 = pneg %p2279_p11  ;;  %p2075_p10 = por %p2074_p7, %p2073_p5 }
  0x16   : > { %p2068_p0 = pnand %p2066_p13, %p2056_p12 }
  0x18   : > { %p2069_p3 = pneg %p2068_p0 }
  0x1a   : > { %p2076_p9 = pnand %p2075_p10, %p2069_p3 }
  0x1c   : > { %2079 = shalt.err (!%p2076_p9)
}
  0x1d   : > { %s2206_s27 = smov 2816   ;;  %s2207_s28 = smov 176  }
  0x1e   : > { %1992 = dma.hbm_to_vmem [thread:$0]  (!%p2279_p11), %s2520_s1, 90112, %s132_s22, [#allocation6], %s2206_s27, %s2206_s27, %s2207_s28  }
  0x1f   : > { %s2091_s4 = scalar_lea.vmem %s146_s25, 352  ;;  %p2099_p2 = scmp.lt.s32.totalorder %s146_s25, %s146_s25 }
  0x20   : > { %p2092_p1 = scmp.ne.s32.totalorder %s146_s25, %s2091_s4  ;;  %p2100_p6 = scmp.lt.s32.totalorder %s2091_s4, %s2091_s4 }
  0x22   : > { %p2094_p13 = pnand %p2092_p1, %p2056_p12  ;;  %p2101_p5 = por %p2100_p6, %p2099_p2 }
  0x24   : > { %p2095_p0 = pneg %p2094_p13 }
  0x26   : > { %p2102_p10 = pnand %p2101_p5, %p2095_p0 }
  0x28   : > { %2105 = shalt.err (!%p2102_p10)
}
  0x29   : > { %1995 = dma.hbm_to_vmem [thread:$0]  (!%p2279_p11), %s2521_s2, 352, %s146_s25, [#allocation6]  }
  0x2a   : > { %s2302_s7 = sadd.s32 1, %s2202_s15   ;;  %s27_s8 = sadd.s32 1, %s2198_s14 }
  0x2b   : > { %s24_s9 = ssub.s32 %s2202_s15, %s2302_s7  ;;  %p34_p1 = scmp.ne.s32.totalorder %s2198_s14, %s2194_s13 }
  0x2c   : > { %p25_p2 = scmp.eq.s32.totalorder %s24_s9, 0  ;;  %p35_p6 = scmp.eq.s32.totalorder %s2202_s15, 0 }
  0x2d   : > { %p2531_p12 = scmp.eq.s32.totalorder %s2251_s16, 1  ;;  %p2006_p7 = scmp.lt.s32.totalorder %s2202_s15, 2 }
  0x2e   : > { %s2318_s11 = scalar_select %p25_p2, %s2198_s14, %s27_s8  }
  0x2f   : > { %p2312_p3 = por %p2531_p12, %p34_p1  ;;  %p36_p9 = por %p35_p6, %p34_p1 }
  0x30   : > { %s156_s17 = sand.u32 1, %s2198_s14   ;;  %s1974_s22 = sshll.u32 %s2202_s15, 8 }
  0x31   : > { %s2532_s10 = scalar_select %p2312_p3, 1, 0 }
  0x32   : > { %s1962_s21 = sshll.u32 %s156_s17, 4  ;;  %s2325_s25 = scalar_lea.hbm %s2519_s0, %s1974_s22 }
  0x33   : > { %s160_s26 = scalar_lea.vmem [#allocation2], %s1962_s21  ;;  %p2327_p11 = pnand %p2006_p7, %p36_p9 }
  0x34   : > { %s168_s27 = sshll.u32 %s160_s26, 4  ;;  %s157_s29 = scalar_lea.sflag [#allocation3], %s156_s17  ;;  %s169_s27 = int_to_ptr.vmem [resolvable:$true] %s168_s27 }
  0x35   : > { %s2106_s30 = scalar_lea.hbm %s2325_s25, 256  ;;  %p2108_p0 = pneg %p2327_p11 }
  0x36   : > { %p2107_p13 = scmp.ne.s32.totalorder %s2325_s25, %s2106_s30  ;;  %s2111_s6 = scalar_lea.hbm %s2519_s0, 512 }
  0x37   : > { %p2112_p1 = scmp.lt.s32.totalorder %s2325_s25, %s2519_s0  ;;  %p2113_p2 = scmp.lt.s32.totalorder %s2111_s6, %s2106_s30 }
  0x38   : > { %p2109_p5 = pnand %p2108_p0, %p2107_p13 }
  0x39   : > { %p2114_p6 = por %p2113_p2, %p2112_p1 }
  0x3a   : > { %p2110_p10 = pneg %p2109_p5 }
  0x3c   : > { %p2115_p12 = pnand %p2114_p6, %p2110_p10 }
  0x3e   : > { %2118 = shalt.err (!%p2115_p12)
}
  0x3f   : > { %s2119_s21 = scalar_lea.vmem %s169_s27, 256  ;;  %s2208_s17 = smov [#allocation2]  }
  0x40   : > { %p2120_p7 = scmp.ne.s32.totalorder %s169_s27, %s2119_s21  ;;  %s2124_s22 = sshll.u32 %s2208_s17, 4  ;;  %s2125_s22 = int_to_ptr.vmem [resolvable:$false] %s2124_s22 }
  0x41   : > { %s2126_s23 = scalar_lea.vmem %s2125_s22, 512  ;;  %p2127_p13 = scmp.lt.s32.totalorder %s169_s27, %s2125_s22 }
  0x42   : > { %p2122_p9 = pnand %p2120_p7, %p2108_p0  ;;  %p2128_p5 = scmp.lt.s32.totalorder %s2126_s23, %s2119_s21 }
  0x44   : > { %p2123_p3 = pneg %p2122_p9  ;;  %p2129_p4 = por %p2128_p5, %p2127_p13 }
  0x46   : > { %p2130_p8 = pnand %p2129_p4, %p2123_p3 }
  0x48   : > { %2133 = shalt.err (!%p2130_p8)
}
  0x49   : > { %1999 = dma.hbm_to_vmem [thread:$0]  (!%p2327_p11), %s2325_s25, 256, %s169_s27, %s157_s29  }
  0x4a   : > { %p2534_p10 = scmp.ne.s32.totalorder %s2529_s20, 0 }
  0x4b   : > { %s2348_s24 = sand.u32 (!%p2534_p10), 1, %s2194_s13   ;;  %p2535_p0 = scmp.ne.s32.totalorder (!%p2534_p10), %s2527_s18, 0 }
  0x4c   : > { %177 = sbr.rel (%p2534_p10) target bundleno = 680 (0x2a8), region = 32  ;;  %s1966_s26 = sshll.u32 (!%p2534_p10), %s2348_s24, 4 }
  0x4d   : > { %s180_s30 = scalar_lea.sflag (!%p2534_p10), [#allocation3], %s2348_s24  ;;  %s2352_s4 = scalar_lea.vmem (!%p2534_p10), [#allocation2], %s1966_s26 }
  0x51   : > { %2177 = dma.done.wait (%p2535_p0), %s180_s30, 256  }
  0x52   : > { %2179 = vsyncadd (%p2535_p0), %s180_s30, 4294967040  ;;  %p2536_p4 = scmp.eq.s32.totalorder %s2251_s16, 0 }
  0x54   : > { %2181 = dma.done.wait (%p2536_p4), [#allocation6], 90464   ;;  %p2537_p8 = pmov %p2536_p4 }
  0x55   : > { %v561_v0 = vld [vmem:[#allocation5 + $0xa58] sm:$0xff]  ;;  %v560_v1 = vld [vmem:[#allocation5 + $0xa50] sm:$0xff]  ;;  %v539_v2 = vld [vmem:[#allocation5 + $0x9a8] sm:$0xff]  ;;  %s1975_s18 = smul.u32 176, %s2348_s24  ;;  %s1854_s6 = scalar_lea.sflag [#allocation4], %s2348_s24 }
  0x56   : > { %2183 = vsyncadd (%p2537_p8), [#allocation6], 4294876832  ;;  %1050 = vmatprep.subr.mxu0 %v561_v0  ;;  %v538_v3 = vld [vmem:[#allocation5 + $0x9a0] sm:$0xff]  ;;  %v517_v4 = vld [vmem:[#allocation5 + $0x8f8] sm:$0xff]  ;;  %s1976_s25 = smul.u32 2816, %s2251_s16  ;;  %p2538_p11 = scmp.ne.s32.totalorder %s2532_s10, 0 }
  0x57   : > { %1051 = vmatpush1.msra.mxu0 %v560_v1  ;;  %v516_v5 = vld [vmem:[#allocation5 + $0x8f0] sm:$0xff]  ;;  %v495_v6 = vld [vmem:[#allocation5 + $0x848] sm:$0xff]  ;;  %v494_v7 = vld [vmem:[#allocation5 + $0x840] sm:$0xff]  ;;  %s2407_s20 = scalar_lea.vmem [#allocation8], %s1975_s18  ;;  %s2209_s9 = smov [#allocation8]  }
  0x58   : > { %1052 = vmatprep.subr.mxu0 %v539_v2  ;;  %v473_v8 = vld [vmem:[#allocation5 + $0x798] sm:$0xff]  ;;  %v472_v9 = vld [vmem:[#allocation5 + $0x790] sm:$0xff]  ;;  %v451_v10 = vld [vmem:[#allocation5 + $0x6e8] sm:$0xff]  ;;  %s1868_s27 = sshll.u32 %s2407_s20, 4  ;;  %s1866_s5 = scalar_lea.hbm %s2522_s3, %s1976_s25  ;;  %s1869_s27 = int_to_ptr.vmem [resolvable:$true] %s1868_s27 }
  0x59   : > { %1053 = vmatpush1.msra.mxu0 %v538_v3  ;;  %v450_v11 = vld [vmem:[#allocation5 + $0x6e0] sm:$0xff]  ;;  %v429_v12 = vld [vmem:[#allocation5 + $0x638] sm:$0xff]  ;;  %v428_v13 = vld [vmem:[#allocation5 + $0x630] sm:$0xff]  ;;  %s2134_s8 = scalar_lea.vmem %s1869_s27, 2816  ;;  %s2138_s16 = sshll.u32 %s2209_s9, 4  ;;  %s2139_s16 = int_to_ptr.vmem [resolvable:$false] %s2138_s16 }
  0x5a   : > { %1054 = vmatprep.subr.mxu0 %v517_v4  ;;  %v407_v14 = vld [vmem:[#allocation5 + $0x588] sm:$0xff]  ;;  %v406_v15 = vld [vmem:[#allocation5 + $0x580] sm:$0xff]  ;;  %v385_v16 = vld [vmem:[#allocation5 + $0x4d8] sm:$0xff]  ;;  %p2135_p3 = scmp.ne.s32.totalorder %s1869_s27, %s2134_s8  ;;  %s2140_s21 = scalar_lea.vmem %s2139_s16, 5632 }
  0x5b   : > { %1055 = vmatpush1.msra.mxu0 %v516_v5  ;;  %v384_v17 = vld [vmem:[#allocation5 + $0x4d0] sm:$0xff]  ;;  %v363_v18 = vld [vmem:[#allocation5 + $0x428] sm:$0xff]  ;;  %v362_v19 = vld [vmem:[#allocation5 + $0x420] sm:$0xff]  ;;  %p2141_p6 = scmp.lt.s32.totalorder %s1869_s27, %s2139_s16  ;;  %p2142_p12 = scmp.lt.s32.totalorder %s2140_s21, %s2134_s8 }
  0x5c   : > { %1056 = vmatprep.subr.mxu0 %v495_v6  ;;  %v341_v20 = vld [vmem:[#allocation5 + $0x378] sm:$0xff]  ;;  %v340_v21 = vld [vmem:[#allocation5 + $0x370] sm:$0xff]  ;;  %v319_v22 = vld [vmem:[#allocation5 + $0x2c8] sm:$0xff]  ;;  %p2136_p1 = pnand %p2135_p3, %p2538_p11 }
  0x5d   : > { %1057 = vmatpush1.msra.mxu0 %v494_v7  ;;  %v318_v23 = vld [vmem:[#allocation5 + $0x2c0] sm:$0xff]  ;;  %v297_v24 = vld [vmem:[#allocation5 + $0x218] sm:$0xff]  ;;  %v563_v25 = vld [vmem:[#allocation5 + $0xa68] sm:$0xff]  ;;  %p2143_p7 = por %p2142_p12, %p2141_p6 }
  0x5e   : > { %1058 = vmatprep.subr.mxu0 %v473_v8  ;;  %v2363_v26 = vld [vmem:[%s2352_s4 + $0x8] sm:$0xff]  ;;  %1121 = vmatprep.subr.mxu1 %v563_v25  ;;  %v562_v28 = vld [vmem:[#allocation5 + $0xa60] sm:$0xff]  ;;  %v296_v31 = vld [vmem:[#allocation5 + $0x210] sm:$0xff]  ;;  %p2137_p2 = pneg %p2136_p1 }
  0x5f   : > { %1059 = vmatpush1.msra.mxu0 %v472_v9  ;;  %v1970_v27 = vmul.f32 -1.442695, %v2363_v26  ;;  %v2367_v29 = vld [vmem:[%s2352_s4] sm:$0xff]  ;;  %v541_v30 = vld [vmem:[#allocation5 + $0x9b8] sm:$0xff]  ;;  %1122 = vmatpush1.msra.mxu1 %v562_v28  ;;  %v275_v34 = vld [vmem:[#allocation5 + $0x168] sm:$0xff] }
  0x60   : > { %1060 = vmatprep.subr.mxu0 %v451_v10  ;;  %v1969_v32 = vmul.f32 -1.442695, %v2367_v29  ;;  %v540_v33 = vld [vmem:[#allocation5 + $0x9b0] sm:$0xff]  ;;  %1123 = vmatprep.subr.mxu1 %v541_v30  ;;  %v519_v35 = vld [vmem:[#allocation5 + $0x908] sm:$0xff]  ;;  %v518_v36 = vld [vmem:[#allocation5 + $0x900] sm:$0xff]  ;;  %p2144_p9 = pnand %p2143_p7, %p2137_p2 }
  0x61   : > { %1061 = vmatpush1.msra.mxu0 %v450_v11  ;;  %2046 = vpow2.f32 %v1970_v27  ;;  %v274_v37 = vld [vmem:[#allocation5 + $0x160] sm:$0xff]  ;;  %1124 = vmatpush1.msra.mxu1 %v540_v33  ;;  %v497_v38 = vld [vmem:[#allocation5 + $0x858] sm:$0xff]  ;;  %v496_v40 = vld [vmem:[#allocation5 + $0x850] sm:$0xff] }
  0x62   : > { %1062 = vmatprep.subr.mxu0 %v429_v12  ;;  %2048 = vpow2.f32 %v1969_v32  ;;  %v253_v39 = vld [vmem:[#allocation5 + $0xb8] sm:$0xff]  ;;  %1125 = vmatprep.subr.mxu1 %v519_v35  ;;  %v252_v41 = vld [vmem:[#allocation5 + $0xb0] sm:$0xff]  ;;  %v475_v42 = vld [vmem:[#allocation5 + $0x7a8] sm:$0xff] }
  0x63   : > { %1063 = vmatpush1.msra.mxu0 %v428_v13  ;;  %1126 = vmatpush1.msra.mxu1 %v518_v36  ;;  %v231_v43 = vld [vmem:[#allocation5 + $0x8] sm:$0xff]  ;;  %v474_v44 = vld [vmem:[#allocation5 + $0x7a0] sm:$0xff]  ;;  %v453_v46 = vld [vmem:[#allocation5 + $0x6f8] sm:$0xff] }
  0x64   : > { %1064 = vmatprep.subr.mxu0 %v407_v14  ;;  %1127 = vmatprep.subr.mxu1 %v497_v38  ;;  %v230_v45 = vld [vmem:[#allocation5] sm:$0xff]  ;;  %v913_v47 = vld [vmem:[#allocation5 + $0x1558] sm:$0xff]  ;;  %v452_v48 = vld [vmem:[#allocation5 + $0x6f0] sm:$0xff] }
  0x65   : > { %1065 = vmatpush1.msra.mxu0 %v406_v15  ;;  %1128 = vmatpush1.msra.mxu1 %v496_v40  ;;  %v912_v49 = vld [vmem:[#allocation5 + $0x1550] sm:$0xff]  ;;  %v431_v50 = vld [vmem:[#allocation5 + $0x648] sm:$0xff]  ;;  %v430_v52 = vld [vmem:[#allocation5 + $0x640] sm:$0xff] }
  0x66   : > { %1066 = vmatprep.subr.mxu0 %v385_v16  ;;  %1129 = vmatprep.subr.mxu1 %v475_v42  ;;  %v891_v51 = vld [vmem:[#allocation5 + $0x14a8] sm:$0xff]  ;;  %v890_v53 = vld [vmem:[#allocation5 + $0x14a0] sm:$0xff]  ;;  %v409_v54 = vld [vmem:[#allocation5 + $0x598] sm:$0xff] }
  0x67   : > { %1067 = vmatpush1.msra.mxu0 %v384_v17  ;;  %1130 = vmatpush1.msra.mxu1 %v474_v44  ;;  %v869_v55 = vld [vmem:[#allocation5 + $0x13f8] sm:$0xff]  ;;  %v408_v56 = vld [vmem:[#allocation5 + $0x590] sm:$0xff]  ;;  %v387_v58 = vld [vmem:[#allocation5 + $0x4e8] sm:$0xff] }
  0x68   : > { %1068 = vmatprep.subr.mxu0 %v363_v18  ;;  %1131 = vmatprep.subr.mxu1 %v453_v46  ;;  %v868_v57 = vld [vmem:[#allocation5 + $0x13f0] sm:$0xff]  ;;  %v847_v59 = vld [vmem:[#allocation5 + $0x1348] sm:$0xff]  ;;  %v386_v60 = vld [vmem:[#allocation5 + $0x4e0] sm:$0xff] }
  0x69   : > { %1069 = vmatpush1.msra.mxu0 %v362_v19  ;;  %1132 = vmatpush1.msra.mxu1 %v452_v48  ;;  %v846_v62 = vld [vmem:[#allocation5 + $0x1340] sm:$0xff]  ;;  %v365_v63 = vld [vmem:[#allocation5 + $0x438] sm:$0xff]  ;;  %v364_v3 = vld [vmem:[#allocation5 + $0x430] sm:$0xff] }
  0x6a   : > { %1070 = vmatprep.subr.mxu0 %v341_v20  ;;  %1133 = vmatprep.subr.mxu1 %v431_v50  ;;  %v825_v1 = vld [vmem:[#allocation5 + $0x1298] sm:$0xff]  ;;  %v824_v4 = vld [vmem:[#allocation5 + $0x1290] sm:$0xff]  ;;  %v343_v5 = vld [vmem:[#allocation5 + $0x388] sm:$0xff] }
  0x6b   : > { %1071 = vmatpush1.msra.mxu0 %v340_v21  ;;  %1134 = vmatpush1.msra.mxu1 %v430_v52  ;;  %v803_v6 = vld [vmem:[#allocation5 + $0x11e8] sm:$0xff]  ;;  %v342_v7 = vld [vmem:[#allocation5 + $0x380] sm:$0xff]  ;;  %v321_v10 = vld [vmem:[#allocation5 + $0x2d8] sm:$0xff] }
  0x6c   : > { %1072 = vmatprep.subr.mxu0 %v319_v22  ;;  %1135 = vmatprep.subr.mxu1 %v409_v54  ;;  %v802_v8 = vld [vmem:[#allocation5 + $0x11e0] sm:$0xff]  ;;  %v781_v11 = vld [vmem:[#allocation5 + $0x1138] sm:$0xff]  ;;  %v320_v12 = vld [vmem:[#allocation5 + $0x2d0] sm:$0xff] }
  0x6d   : > { %1073 = vmatpush1.msra.mxu0 %v318_v23  ;;  %1136 = vmatpush1.msra.mxu1 %v408_v56  ;;  %v780_v13 = vld [vmem:[#allocation5 + $0x1130] sm:$0xff]  ;;  %v299_v14 = vld [vmem:[#allocation5 + $0x228] sm:$0xff]  ;;  %v298_v16 = vld [vmem:[#allocation5 + $0x220] sm:$0xff] }
  0x6e   : > { %1074 = vmatprep.subr.mxu0 %v297_v24  ;;  %v2047_v61 = vpop.eup %2046  ;;  %1137 = vmatprep.subr.mxu1 %v387_v58  ;;  %v759_v15 = vld [vmem:[#allocation5 + $0x1088] sm:$0xff]  ;;  %v758_v17 = vld [vmem:[#allocation5 + $0x1080] sm:$0xff]  ;;  %v277_v18 = vld [vmem:[#allocation5 + $0x178] sm:$0xff] }
  0x6f   : > { %1075 = vmatpush1.msra.mxu0 %v296_v31  ;;  %v2049_v0 = vpop.eup %2048  ;;  %v223_v2 = vadd.f32 1.0, %v2047_v61  ;;  %1138 = vmatpush1.msra.mxu1 %v386_v60  ;;  %v737_v19 = vld [vmem:[#allocation5 + $0xfd8] sm:$0xff]  ;;  %v276_v20 = vld [vmem:[#allocation5 + $0x170] sm:$0xff]  ;;  %v255_v22 = vld [vmem:[#allocation5 + $0xc8] sm:$0xff] }
  0x70   : > { %1076 = vmatprep.subr.mxu0 %v275_v34  ;;  %1139 = vmatprep.subr.mxu1 %v365_v63  ;;  %v222_v9 = vadd.f32 1.0, %v2049_v0  ;;  %v736_v21 = vld [vmem:[#allocation5 + $0xfd0] sm:$0xff]  ;;  %v715_v23 = vld [vmem:[#allocation5 + $0xf28] sm:$0xff]  ;;  %v254_v24 = vld [vmem:[#allocation5 + $0xc0] sm:$0xff] }
  0x71   : > { %1077 = vmatpush1.msra.mxu0 %v274_v37  ;;  %2050 = vrcp.f32 %v223_v2  ;;  %1140 = vmatpush1.msra.mxu1 %v364_v3  ;;  %v714_v25 = vld [vmem:[#allocation5 + $0xf20] sm:$0xff]  ;;  %v233_v27 = vld [vmem:[#allocation5 + $0x18] sm:$0xff]  ;;  %v232_v30 = vld [vmem:[#allocation5 + $0x10] sm:$0xff] }
  0x72   : > { %1078 = vmatprep.subr.mxu0 %v253_v39  ;;  %1141 = vmatprep.subr.mxu1 %v343_v5  ;;  %2052 = vrcp.f32 %v222_v9  ;;  %v693_v28 = vld [vmem:[#allocation5 + $0xe78] sm:$0xff]  ;;  %v692_v31 = vld [vmem:[#allocation5 + $0xe70] sm:$0xff]  ;;  %v915_v32 = vld [vmem:[#allocation5 + $0x1568] sm:$0xff] }
  0x73   : > { %1079 = vmatpush1.msra.mxu0 %v252_v41  ;;  %1142 = vmatpush1.msra.mxu1 %v342_v7  ;;  %v671_v33 = vld [vmem:[#allocation5 + $0xdc8] sm:$0xff]  ;;  %v914_v34 = vld [vmem:[#allocation5 + $0x1560] sm:$0xff]  ;;  %v649_v37 = vld [vmem:[#allocation5 + $0xd18] sm:$0xff] }
  0x74   : > { %1080 = vmatprep.subr.mxu0 %v231_v43  ;;  %1143 = vmatprep.subr.mxu1 %v321_v10  ;;  %v670_v36 = vld [vmem:[#allocation5 + $0xdc0] sm:$0xff]  ;;  %v893_v39 = vld [vmem:[#allocation5 + $0x14b8] sm:$0xff]  ;;  %v648_v40 = vld [vmem:[#allocation5 + $0xd10] sm:$0xff] }
  0x75   : > { %1081 = vmatpush1.msra.mxu0 %v230_v45  ;;  %1144 = vmatpush1.msra.mxu1 %v320_v12  ;;  %v892_v41 = vld [vmem:[#allocation5 + $0x14b0] sm:$0xff]  ;;  %v627_v42 = vld [vmem:[#allocation5 + $0xc68] sm:$0xff]  ;;  %v626_v44 = vld [vmem:[#allocation5 + $0xc60] sm:$0xff] }
  0x76   : > { %1082 = vmatprep.subr.mxu0 %v913_v47  ;;  %1145 = vmatprep.subr.mxu1 %v299_v14  ;;  %v871_v43 = vld [vmem:[#allocation5 + $0x1408] sm:$0xff]  ;;  %v870_v45 = vld [vmem:[#allocation5 + $0x1400] sm:$0xff]  ;;  %v605_v47 = vld [vmem:[#allocation5 + $0xbb8] sm:$0xff] }
  0x77   : > { %1083 = vmatpush2.msra.mxu0 %v912_v49  ;;  %1146 = vmatpush1.msra.mxu1 %v298_v16  ;;  %v604_v48 = vld [vmem:[#allocation5 + $0xbb0] sm:$0xff]  ;;  %v583_v50 = vld [vmem:[#allocation5 + $0xb08] sm:$0xff]  ;;  %v582_v52 = vld [vmem:[#allocation5 + $0xb00] sm:$0xff] }
  0x78   : > { %1084 = vmatprep.subr.mxu0 %v891_v51  ;;  %1147 = vmatprep.subr.mxu1 %v277_v18  ;;  %v848_v49 = vld [vmem:[#allocation5 + $0x1350] sm:$0xff]  ;;  %v827_v51 = vld [vmem:[#allocation5 + $0x12a8] sm:$0xff]  ;;  %v826_v54 = vld [vmem:[#allocation5 + $0x12a0] sm:$0xff] }
  0x79   : > { %1085 = vmatpush2.msra.mxu0 %v890_v53  ;;  %1148 = vmatpush1.msra.mxu1 %v276_v20  ;;  %v564_v56 = vld [vmem:[#allocation5 + $0xa70] sm:$0xff]  ;;  %v543_v58 = vld [vmem:[#allocation5 + $0x9c8] sm:$0xff]  ;;  %v542_v60 = vld [vmem:[#allocation5 + $0x9c0] sm:$0xff] }
  0x7a   : > { %1086 = vmatprep.subr.mxu0 %v869_v55  ;;  %1149 = vmatprep.subr.mxu1 %v255_v22  ;;  %v565_v55 = vld [vmem:[#allocation5 + $0xa78] sm:$0xff]  ;;  %v783_v61 = vld [vmem:[#allocation5 + $0x1148] sm:$0xff]  ;;  %v520_v63 = vld [vmem:[#allocation5 + $0x910] sm:$0xff] }
  0x7b   : > { %1087 = vmatpush2.msra.mxu0 %v868_v57  ;;  %1150 = vmatpush1.msra.mxu1 %v254_v24  ;;  %v805_v57 = vld [vmem:[#allocation5 + $0x11f8] sm:$0xff]  ;;  %v760_v2 = vld [vmem:[#allocation5 + $0x1090] sm:$0xff]  ;;  %v498_v3 = vld [vmem:[#allocation5 + $0x860] sm:$0xff] }
  0x7c   : > { %1088 = vmatprep.subr.mxu0 %v847_v59  ;;  %1151 = vmatprep.subr.mxu1 %v233_v27  ;;  %v804_v59 = vld [vmem:[#allocation5 + $0x11f0] sm:$0xff]  ;;  %v761_v0 = vld [vmem:[#allocation5 + $0x1098] sm:$0xff]  ;;  %v455_v9 = vld [vmem:[#allocation5 + $0x708] sm:$0xff] }
  0x7d   : > { %1089 = vmatpush2.msra.mxu0 %v846_v62  ;;  %1152 = vmatpush1.msra.mxu1 %v232_v30  ;;  %v782_v62 = vld [vmem:[#allocation5 + $0x1140] sm:$0xff]  ;;  %v477_v5 = vld [vmem:[#allocation5 + $0x7b8] sm:$0xff]  ;;  %v476_v7 = vld [vmem:[#allocation5 + $0x7b0] sm:$0xff] }
  0x7e   : > { %1090 = vmatprep.subr.mxu0 %v825_v1  ;;  %v2051_v35 = vpop.eup %2050  ;;  %1153 = vmatprep.subr.mxu1 %v915_v32  ;;  %v499_v1 = vld [vmem:[#allocation5 + $0x868] sm:$0xff]  ;;  %v716_v10 = vld [vmem:[#allocation5 + $0xf30] sm:$0xff]  ;;  %v694_v14 = vld [vmem:[#allocation5 + $0xe80] sm:$0xff] }
  0x7f   : > { %1091 = vmatpush2.msra.mxu0 %v824_v4  ;;  %v2371_v38 = vmul.f32 %v2051_v35, %v2363_v26  ;;  %1154 = vmatpush2.msra.mxu1 %v914_v34  ;;  %v2053_v46 = vpop.eup %2052  ;;  %v849_v26 = vld [vmem:[#allocation5 + $0x1358] sm:$0xff]  ;;  %v739_v4 = vld [vmem:[#allocation5 + $0xfe8] sm:$0xff]  ;;  %v672_v18 = vld [vmem:[#allocation5 + $0xdd0] sm:$0xff] }
  0x80   : > { %1092 = vmatprep.subr.mxu0 %v803_v6  ;;  %1155 = vmatprep.subr.mxu1 %v893_v39  ;;  %v2375_v53 = vmul.f32 %v2053_v46, %v2367_v29  ;;  %v521_v29 = vld [vmem:[#allocation5 + $0x918] sm:$0xff]  ;;  %v738_v6 = vld [vmem:[#allocation5 + $0xfe0] sm:$0xff]  ;;  %v695_v12 = vld [vmem:[#allocation5 + $0xe88] sm:$0xff] }
  0x81   : > { %1093 = vmatpush2.msra.mxu0 %v802_v8  ;;  %1114 = vmatprep.mubr.f32.mxu0 %v2371_v38  ;;  %v717_v8 = vld [vmem:[#allocation5 + $0xf38] sm:$0xff]  ;;  %v651_v20 = vld [vmem:[#allocation5 + $0xd28] sm:$0xff]  ;;  %v650_v22 = vld [vmem:[#allocation5 + $0xd20] sm:$0xff] }
  0x82   : > { %1094 = vmatprep.subr.mxu0 %v781_v11  ;;  %1156 = vmatpush2.msra.mxu1 %v892_v41  ;;  %v454_v11 = vld [vmem:[#allocation5 + $0x700] sm:$0xff]  ;;  %v673_v16 = vld [vmem:[#allocation5 + $0xdd8] sm:$0xff]  ;;  %v628_v27 = vld [vmem:[#allocation5 + $0xc70] sm:$0xff] }
  0x83   : > { %1095 = vmatpush2.msra.mxu0 %v780_v13  ;;  %1157 = vmatprep.subr.mxu1 %v871_v43  ;;  %v433_v13 = vld [vmem:[#allocation5 + $0x658] sm:$0xff]  ;;  %v607_v30 = vld [vmem:[#allocation5 + $0xbc8] sm:$0xff]  ;;  %v606_v32 = vld [vmem:[#allocation5 + $0xbc0] sm:$0xff] }
  0x84   : > { %1096 = vmatprep.subr.mxu0 %v759_v15  ;;  %1158 = vmatpush2.msra.mxu1 %v870_v45  ;;  %v432_v15 = vld [vmem:[#allocation5 + $0x650] sm:$0xff]  ;;  %v629_v24 = vld [vmem:[#allocation5 + $0xc78] sm:$0xff]  ;;  %v323_v35 = vld [vmem:[#allocation5 + $0x2e8] sm:$0xff] }
  0x85   : > { %1097 = vmatpush2.msra.mxu0 %v758_v17  ;;  %1159 = vmatprep.subr.mxu1 %v849_v26  ;;  %v411_v17 = vld [vmem:[#allocation5 + $0x5a8] sm:$0xff]  ;;  %v585_v34 = vld [vmem:[#allocation5 + $0xb18] sm:$0xff]  ;;  %v300_v41 = vld [vmem:[#allocation5 + $0x230] sm:$0xff] }
  0x86   : > { %1098 = vmatprep.subr.mxu0 %v737_v19  ;;  %1160 = vmatpush2.msra.mxu1 %v848_v49  ;;  %v410_v19 = vld [vmem:[#allocation5 + $0x5a0] sm:$0xff]  ;;  %v301_v39 = vld [vmem:[#allocation5 + $0x238] sm:$0xff]  ;;  %v544_v26 = vld [vmem:[#allocation5 + $0x9d0] sm:$0xff] }
  0x87   : > { %1099 = vmatpush2.msra.mxu0 %v736_v21  ;;  %1161 = vmatprep.subr.mxu1 %v827_v51  ;;  %v389_v21 = vld [vmem:[#allocation5 + $0x4f8] sm:$0xff]  ;;  %v278_v43 = vld [vmem:[#allocation5 + $0x180] sm:$0xff]  ;;  %v523_v49 = vld [vmem:[#allocation5 + $0x928] sm:$0xff] }
  0x88   : > { %1100 = vmatprep.subr.mxu0 %v715_v23  ;;  %1162 = vmatpush2.msra.mxu1 %v826_v54  ;;  %v388_v23 = vld [vmem:[#allocation5 + $0x4f0] sm:$0xff]  ;;  %v257_v45 = vld [vmem:[#allocation5 + $0xd8] sm:$0xff]  ;;  %v522_v51 = vld [vmem:[#allocation5 + $0x920] sm:$0xff] }
  0x89   : > { %1101 = vmatpush2.msra.mxu0 %v714_v25  ;;  %1163 = vmatprep.subr.mxu1 %v805_v57  ;;  %v367_v25 = vld [vmem:[#allocation5 + $0x448] sm:$0xff]  ;;  %v545_v46 = vld [vmem:[#allocation5 + $0x9d8] sm:$0xff] }
  0x8a   : > { %1102 = vmatprep.subr.mxu0 %v693_v28  ;;  %1164 = vmatpush2.msra.mxu1 %v804_v59  ;;  %v366_v28 = vld [vmem:[#allocation5 + $0x440] sm:$0xff]  ;;  %v501_v54 = vld [vmem:[#allocation5 + $0x878] sm:$0xff]  ;;  %v895_v57 = vld [vmem:[#allocation5 + $0x14c8] sm:$0xff] }
  0x8b   : > { %1103 = vmatpush2.msra.mxu0 %v692_v31  ;;  %1165 = vmatprep.subr.mxu1 %v783_v61  ;;  %v345_v31 = vld [vmem:[#allocation5 + $0x398] sm:$0xff]  ;;  %v894_v59 = vld [vmem:[#allocation5 + $0x14c0] sm:$0xff] }
  0x8c   : > { %1104 = vmatprep.subr.mxu0 %v671_v33  ;;  %1166 = vmatpush2.msra.mxu1 %v782_v62  ;;  %v344_v33 = vld [vmem:[#allocation5 + $0x390] sm:$0xff]  ;;  %v873_v61 = vld [vmem:[#allocation5 + $0x1418] sm:$0xff] }
  0x8d   : > { %1105 = vmatpush2.msra.mxu0 %v670_v36  ;;  %1167 = vmatprep.subr.mxu1 %v761_v0  ;;  %v584_v36 = vld [vmem:[#allocation5 + $0xb10] sm:$0xff]  ;;  %v851_v0 = vld [vmem:[#allocation5 + $0x1368] sm:$0xff] }
  0x8e   : > { %1106 = vmatprep.subr.mxu0 %v649_v37  ;;  %1168 = vmatpush2.msra.mxu1 %v760_v2  ;;  %v322_v37 = vld [vmem:[#allocation5 + $0x2e0] sm:$0xff]  ;;  %v872_v62 = vld [vmem:[#allocation5 + $0x1410] sm:$0xff] }
  0x8f   : > { %1107 = vmatpush2.msra.mxu0 %v648_v40  ;;  %1169 = vmatprep.subr.mxu1 %v739_v4  ;;  %v567_v40 = vld [vmem:[#allocation5 + $0xa88] sm:$0xff]  ;;  %v850_v2 = vld [vmem:[#allocation5 + $0x1360] sm:$0xff]  ;;  %v829_v4 = vld [vmem:[#allocation5 + $0x12b8] sm:$0xff] }
  0x90   : > { %1108 = vmatprep.subr.mxu0 %v627_v42  ;;  %1170 = vmatpush2.msra.mxu1 %v738_v6  ;;  %v279_v42 = vld [vmem:[#allocation5 + $0x188] sm:$0xff]  ;;  %v828_v6 = vld [vmem:[#allocation5 + $0x12b0] sm:$0xff] }
  0x91   : > { %1109 = vmatpush2.msra.mxu0 %v626_v44  ;;  %1171 = vmatprep.subr.mxu1 %v717_v8  ;;  %v566_v44 = vld [vmem:[#allocation5 + $0xa80] sm:$0xff]  ;;  %v807_v8 = vld [vmem:[#allocation5 + $0x1208] sm:$0xff] }
  0x92   : > { %1110 = vmatprep.subr.mxu0 %v605_v47  ;;  %1172 = vmatpush2.msra.mxu1 %v716_v10  ;;  %v256_v47 = vld [vmem:[#allocation5 + $0xd0] sm:$0xff]  ;;  %v806_v10 = vld [vmem:[#allocation5 + $0x1200] sm:$0xff] }
  0x93   : > { %1111 = vmatpush2.msra.mxu0 %v604_v48  ;;  %1173 = vmatprep.subr.mxu1 %v695_v12  ;;  %v235_v48 = vld [vmem:[#allocation5 + $0x28] sm:$0xff]  ;;  %v785_v12 = vld [vmem:[#allocation5 + $0x1158] sm:$0xff] }
  0x94   : > { %1112 = vmatprep.subr.mxu0 %v583_v50  ;;  %1174 = vmatpush2.msra.mxu1 %v694_v14  ;;  %v234_v50 = vld [vmem:[#allocation5 + $0x20] sm:$0xff]  ;;  %v784_v14 = vld [vmem:[#allocation5 + $0x1150] sm:$0xff] }
  0x95   : > { %1113 = vmatpush2.msra.mxu0 %v582_v52  ;;  %1175 = vmatprep.subr.mxu1 %v673_v16  ;;  %v917_v52 = vld [vmem:[#allocation5 + $0x1578] sm:$0xff]  ;;  %v763_v16 = vld [vmem:[#allocation5 + $0x10a8] sm:$0xff] }
  0x96   : > { %1115 = vmatmul.mubr.f32.vlgmr.msra.gmra.mxu0 %v2375_v53  ;;  %1192 = vmatprep.subr.mxu0 %v565_v55  ;;  %v916_v55 = vld [vmem:[#allocation5 + $0x1570] sm:$0xff] }
  0x97   : > { %1193 = vmatpush1.msra.mxu0 %v564_v56  ;;  %1176 = vmatpush2.msra.mxu1 %v672_v18  ;;  %v500_v56 = vld [vmem:[#allocation5 + $0x870] sm:$0xff]  ;;  %v762_v18 = vld [vmem:[#allocation5 + $0x10a0] sm:$0xff] }
  0x98   : > { %1194 = vmatprep.subr.mxu0 %v543_v58  ;;  %1177 = vmatprep.subr.mxu1 %v651_v20  ;;  %v479_v58 = vld [vmem:[#allocation5 + $0x7c8] sm:$0xff]  ;;  %v741_v20 = vld [vmem:[#allocation5 + $0xff8] sm:$0xff] }
  0x99   : > { %1195 = vmatpush1.msra.mxu0 %v542_v60  ;;  %1178 = vmatpush2.msra.mxu1 %v650_v22  ;;  %v478_v60 = vld [vmem:[#allocation5 + $0x7c0] sm:$0xff]  ;;  %v740_v22 = vld [vmem:[#allocation5 + $0xff0] sm:$0xff] }
  0x9a   : > { %1196 = vmatprep.subr.mxu0 %v521_v29  ;;  %1179 = vmatprep.subr.mxu1 %v629_v24  ;;  %v457_v29 = vld [vmem:[#allocation5 + $0x718] sm:$0xff]  ;;  %v719_v24 = vld [vmem:[#allocation5 + $0xf48] sm:$0xff] }
  0x9b   : > { %1197 = vmatpush1.msra.mxu0 %v520_v63  ;;  %1180 = vmatpush2.msra.mxu1 %v628_v27  ;;  %v456_v63 = vld [vmem:[#allocation5 + $0x710] sm:$0xff]  ;;  %v718_v27 = vld [vmem:[#allocation5 + $0xf40] sm:$0xff] }
  0x9c   : > { %1198 = vmatprep.subr.mxu0 %v499_v1  ;;  %1181 = vmatprep.subr.mxu1 %v607_v30  ;;  %v435_v1 = vld [vmem:[#allocation5 + $0x668] sm:$0xff]  ;;  %v697_v30 = vld [vmem:[#allocation5 + $0xe98] sm:$0xff] }
  0x9d   : > { %1199 = vmatpush1.msra.mxu0 %v498_v3  ;;  %1182 = vmatpush2.msra.mxu1 %v606_v32  ;;  %v434_v3 = vld [vmem:[#allocation5 + $0x660] sm:$0xff]  ;;  %v696_v32 = vld [vmem:[#allocation5 + $0xe90] sm:$0xff] }
  0x9e   : > { %1200 = vmatprep.subr.mxu0 %v477_v5  ;;  %1183 = vmatprep.subr.mxu1 %v585_v34  ;;  %v413_v5 = vld [vmem:[#allocation5 + $0x5b8] sm:$0xff]  ;;  %v675_v34 = vld [vmem:[#allocation5 + $0xde8] sm:$0xff] }
  0x9f   : > { %1201 = vmatpush1.msra.mxu0 %v476_v7  ;;  %1184 = vmatpush2.msra.mxu1 %v584_v36  ;;  %v412_v7 = vld [vmem:[#allocation5 + $0x5b0] sm:$0xff]  ;;  %v674_v36 = vld [vmem:[#allocation5 + $0xde0] sm:$0xff] }
  0xa0   : > { %1202 = vmatprep.subr.mxu0 %v455_v9  ;;  %1185 = vmatprep.mubr.f32.mxu1 %v2371_v38  ;;  %v391_v9 = vld [vmem:[#allocation5 + $0x508] sm:$0xff] }
  0xa1   : > { %1203 = vmatpush1.msra.mxu0 %v454_v11  ;;  %1263 = vmatprep.subr.mxu1 %v567_v40  ;;  %v390_v11 = vld [vmem:[#allocation5 + $0x500] sm:$0xff]  ;;  %v237_v40 = vld [vmem:[#allocation5 + $0x38] sm:$0xff] }
  0xa2   : > { %1204 = vmatprep.subr.mxu0 %v433_v13  ;;  %1186 = vmatmul.mubr.f32.vlgmr.msra.gmra.mxu1 %v2375_v53  ;;  %v369_v13 = vld [vmem:[#allocation5 + $0x458] sm:$0xff] }
  0xa3   : > { %1205 = vmatpush1.msra.mxu0 %v432_v15  ;;  %1256 = vmatprep.mubr.f32.mxu0 %v2371_v38  ;;  %v368_v15 = vld [vmem:[#allocation5 + $0x450] sm:$0xff] }
  0xa4   : > { %1206 = vmatprep.subr.mxu0 %v411_v17  ;;  %1264 = vmatpush1.msra.mxu1 %v566_v44  ;;  %v347_v17 = vld [vmem:[#allocation5 + $0x3a8] sm:$0xff] }
  0xa5   : > { %1207 = vmatpush1.msra.mxu0 %v410_v19  ;;  %1265 = vmatprep.subr.mxu1 %v545_v46  ;;  %v346_v19 = vld [vmem:[#allocation5 + $0x3a0] sm:$0xff]  ;;  %v919_v44 = vld [vmem:[#allocation5 + $0x1588] sm:$0xff] }
  0xa6   : > { %1208 = vmatprep.subr.mxu0 %v389_v21  ;;  %1266 = vmatpush1.msra.mxu1 %v544_v26  ;;  %v325_v21 = vld [vmem:[#allocation5 + $0x2f8] sm:$0xff]  ;;  %v918_v46 = vld [vmem:[#allocation5 + $0x1580] sm:$0xff] }
  0xa7   : > { %1209 = vmatpush1.msra.mxu0 %v388_v23  ;;  %1267 = vmatprep.subr.mxu1 %v523_v49  ;;  %v324_v23 = vld [vmem:[#allocation5 + $0x2f0] sm:$0xff]  ;;  %v897_v26 = vld [vmem:[#allocation5 + $0x14d8] sm:$0xff] }
  0xa8   : > { %1210 = vmatprep.subr.mxu0 %v367_v25  ;;  %1268 = vmatpush1.msra.mxu1 %v522_v51  ;;  %v303_v25 = vld [vmem:[#allocation5 + $0x248] sm:$0xff]  ;;  %v896_v49 = vld [vmem:[#allocation5 + $0x14d0] sm:$0xff] }
  0xa9   : > { %1211 = vmatpush1.msra.mxu0 %v366_v28  ;;  %1269 = vmatprep.subr.mxu1 %v501_v54  ;;  %v302_v28 = vld [vmem:[#allocation5 + $0x240] sm:$0xff]  ;;  %v875_v51 = vld [vmem:[#allocation5 + $0x1428] sm:$0xff] }
  0xaa   : > { %1212 = vmatprep.subr.mxu0 %v345_v31  ;;  %1270 = vmatpush1.msra.mxu1 %v500_v56  ;;  %v281_v31 = vld [vmem:[#allocation5 + $0x198] sm:$0xff]  ;;  %v874_v54 = vld [vmem:[#allocation5 + $0x1420] sm:$0xff]  ;;  %v568_v56 = vld [vmem:[#allocation5 + $0xa90] sm:$0xff] }
  0xab   : > { %1213 = vmatpush1.msra.mxu0 %v344_v33  ;;  %1271 = vmatprep.subr.mxu1 %v479_v58  ;;  %v280_v33 = vld [vmem:[#allocation5 + $0x190] sm:$0xff]  ;;  %v547_v58 = vld [vmem:[#allocation5 + $0x9e8] sm:$0xff] }
  0xac   : > { %1214 = vmatprep.subr.mxu0 %v323_v35  ;;  %1272 = vmatpush1.msra.mxu1 %v478_v60  ;;  %v259_v35 = vld [vmem:[#allocation5 + $0xe8] sm:$0xff]  ;;  %v546_v60 = vld [vmem:[#allocation5 + $0x9e0] sm:$0xff] }
  0xad   : > { %1215 = vmatpush1.msra.mxu0 %v322_v37  ;;  %1273 = vmatprep.subr.mxu1 %v457_v29  ;;  %v258_v37 = vld [vmem:[#allocation5 + $0xe0] sm:$0xff]  ;;  %v525_v29 = vld [vmem:[#allocation5 + $0x938] sm:$0xff] }
  0xae   : > { %1216 = vmatprep.subr.mxu0 %v301_v39  ;;  %1274 = vmatpush1.msra.mxu1 %v456_v63  ;;  %v653_v39 = vld [vmem:[#allocation5 + $0xd38] sm:$0xff]  ;;  %v524_v63 = vld [vmem:[#allocation5 + $0x930] sm:$0xff] }
  0xaf   : > { %1217 = vmatpush1.msra.mxu0 %v300_v41  ;;  %1275 = vmatprep.subr.mxu1 %v435_v1  ;;  %v652_v41 = vld [vmem:[#allocation5 + $0xd30] sm:$0xff]  ;;  %v503_v1 = vld [vmem:[#allocation5 + $0x888] sm:$0xff] }
  0xb0   : > { %1218 = vmatprep.subr.mxu0 %v279_v42  ;;  %1276 = vmatpush1.msra.mxu1 %v434_v3  ;;  %v236_v42 = vld [vmem:[#allocation5 + $0x30] sm:$0xff]  ;;  %v502_v3 = vld [vmem:[#allocation5 + $0x880] sm:$0xff] }
  0xb1   : > { %1219 = vmatpush1.msra.mxu0 %v278_v43  ;;  %1277 = vmatprep.subr.mxu1 %v413_v5  ;;  %v631_v43 = vld [vmem:[#allocation5 + $0xc88] sm:$0xff]  ;;  %v481_v5 = vld [vmem:[#allocation5 + $0x7d8] sm:$0xff] }
  0xb2   : > { %1220 = vmatprep.subr.mxu0 %v257_v45  ;;  %1278 = vmatpush1.msra.mxu1 %v412_v7  ;;  %v630_v45 = vld [vmem:[#allocation5 + $0xc80] sm:$0xff]  ;;  %v480_v7 = vld [vmem:[#allocation5 + $0x7d0] sm:$0xff] }
  0xb3   : > { %1221 = vmatpush1.msra.mxu0 %v256_v47  ;;  %1279 = vmatprep.subr.mxu1 %v391_v9  ;;  %v609_v47 = vld [vmem:[#allocation5 + $0xbd8] sm:$0xff]  ;;  %v459_v9 = vld [vmem:[#allocation5 + $0x728] sm:$0xff] }
  0xb4   : > { %1222 = vmatprep.subr.mxu0 %v235_v48  ;;  %1280 = vmatpush1.msra.mxu1 %v390_v11  ;;  %v608_v48 = vld [vmem:[#allocation5 + $0xbd0] sm:$0xff]  ;;  %v458_v11 = vld [vmem:[#allocation5 + $0x720] sm:$0xff] }
  0xb5   : > { %1223 = vmatpush1.msra.mxu0 %v234_v50  ;;  %1281 = vmatprep.subr.mxu1 %v369_v13  ;;  %v587_v50 = vld [vmem:[#allocation5 + $0xb28] sm:$0xff]  ;;  %v437_v13 = vld [vmem:[#allocation5 + $0x678] sm:$0xff] }
  0xb6   : > { %1224 = vmatprep.subr.mxu0 %v917_v52  ;;  %1282 = vmatpush1.msra.mxu1 %v368_v15  ;;  %v586_v52 = vld [vmem:[#allocation5 + $0xb20] sm:$0xff]  ;;  %v436_v15 = vld [vmem:[#allocation5 + $0x670] sm:$0xff] }
  0xb7   : > { %1225 = vmatpush2.msra.mxu0 %v916_v55  ;;  %1283 = vmatprep.subr.mxu1 %v347_v17  ;;  %v569_v55 = vld [vmem:[#allocation5 + $0xa98] sm:$0xff]  ;;  %v415_v17 = vld [vmem:[#allocation5 + $0x5c8] sm:$0xff] }
  0xb8   : > { %1226 = vmatprep.subr.mxu0 %v895_v57  ;;  %1284 = vmatpush1.msra.mxu1 %v346_v19  ;;  %v853_v57 = vld [vmem:[#allocation5 + $0x1378] sm:$0xff]  ;;  %v414_v19 = vld [vmem:[#allocation5 + $0x5c0] sm:$0xff] }
  0xb9   : > { %1227 = vmatpush2.msra.mxu0 %v894_v59  ;;  %1285 = vmatprep.subr.mxu1 %v325_v21  ;;  %v852_v59 = vld [vmem:[#allocation5 + $0x1370] sm:$0xff]  ;;  %v393_v21 = vld [vmem:[#allocation5 + $0x518] sm:$0xff] }
  0xba   : > { %1228 = vmatprep.subr.mxu0 %v873_v61  ;;  %1286 = vmatpush1.msra.mxu1 %v324_v23  ;;  %v831_v61 = vld [vmem:[#allocation5 + $0x12c8] sm:$0xff]  ;;  %v392_v23 = vld [vmem:[#allocation5 + $0x510] sm:$0xff] }
  0xbb   : > { %1229 = vmatpush2.msra.mxu0 %v872_v62  ;;  %1287 = vmatprep.subr.mxu1 %v303_v25  ;;  %v830_v62 = vld [vmem:[#allocation5 + $0x12c0] sm:$0xff]  ;;  %v371_v25 = vld [vmem:[#allocation5 + $0x468] sm:$0xff] }
  0xbc   : > { %1230 = vmatprep.subr.mxu0 %v851_v0  ;;  %1288 = vmatpush1.msra.mxu1 %v302_v28  ;;  %v809_v0 = vld [vmem:[#allocation5 + $0x1218] sm:$0xff]  ;;  %v370_v28 = vld [vmem:[#allocation5 + $0x460] sm:$0xff] }
  0xbd   : > { %1231 = vmatpush2.msra.mxu0 %v850_v2  ;;  %1289 = vmatprep.subr.mxu1 %v281_v31  ;;  %v808_v2 = vld [vmem:[#allocation5 + $0x1210] sm:$0xff]  ;;  %v349_v31 = vld [vmem:[#allocation5 + $0x3b8] sm:$0xff] }
  0xbe   : > { %1232 = vmatprep.subr.mxu0 %v829_v4  ;;  %1290 = vmatpush1.msra.mxu1 %v280_v33  ;;  %v787_v4 = vld [vmem:[#allocation5 + $0x1168] sm:$0xff]  ;;  %v348_v33 = vld [vmem:[#allocation5 + $0x3b0] sm:$0xff] }
  0xbf   : > { %1233 = vmatpush2.msra.mxu0 %v828_v6  ;;  %1291 = vmatprep.subr.mxu1 %v259_v35  ;;  %v786_v6 = vld [vmem:[#allocation5 + $0x1160] sm:$0xff]  ;;  %v327_v35 = vld [vmem:[#allocation5 + $0x308] sm:$0xff] }
  0xc0   : > { %1234 = vmatprep.subr.mxu0 %v807_v8  ;;  %1292 = vmatpush1.msra.mxu1 %v258_v37  ;;  %v765_v8 = vld [vmem:[#allocation5 + $0x10b8] sm:$0xff]  ;;  %v326_v37 = vld [vmem:[#allocation5 + $0x300] sm:$0xff] }
  0xc1   : > { %1235 = vmatpush2.msra.mxu0 %v806_v10  ;;  %1293 = vmatprep.subr.mxu1 %v237_v40  ;;  %v764_v10 = vld [vmem:[#allocation5 + $0x10b0] sm:$0xff]  ;;  %v305_v40 = vld [vmem:[#allocation5 + $0x258] sm:$0xff] }
  0xc2   : > { %1236 = vmatprep.subr.mxu0 %v785_v12  ;;  %1294 = vmatpush1.msra.mxu1 %v236_v42  ;;  %v743_v12 = vld [vmem:[#allocation5 + $0x1008] sm:$0xff]  ;;  %v304_v42 = vld [vmem:[#allocation5 + $0x250] sm:$0xff] }
  0xc3   : > { %1237 = vmatpush2.msra.mxu0 %v784_v14  ;;  %1295 = vmatprep.subr.mxu1 %v919_v44  ;;  %v742_v14 = vld [vmem:[#allocation5 + $0x1000] sm:$0xff]  ;;  %v283_v44 = vld [vmem:[#allocation5 + $0x1a8] sm:$0xff] }
  0xc4   : > { %1238 = vmatprep.subr.mxu0 %v763_v16  ;;  %1296 = vmatpush2.msra.mxu1 %v918_v46  ;;  %v721_v16 = vld [vmem:[#allocation5 + $0xf58] sm:$0xff]  ;;  %v282_v46 = vld [vmem:[#allocation5 + $0x1a0] sm:$0xff] }
  0xc5   : > { %1239 = vmatpush2.msra.mxu0 %v762_v18  ;;  %1297 = vmatprep.subr.mxu1 %v897_v26  ;;  %v720_v18 = vld [vmem:[#allocation5 + $0xf50] sm:$0xff]  ;;  %v571_v26 = vld [vmem:[#allocation5 + $0xaa8] sm:$0xff] }
  0xc6   : > { %1240 = vmatprep.subr.mxu0 %v741_v20  ;;  %1298 = vmatpush2.msra.mxu1 %v896_v49  ;;  %v699_v20 = vld [vmem:[#allocation5 + $0xea8] sm:$0xff] }
  0xc7   : > { %1241 = vmatpush2.msra.mxu0 %v740_v22  ;;  %1299 = vmatprep.subr.mxu1 %v875_v51  ;;  %v698_v22 = vld [vmem:[#allocation5 + $0xea0] sm:$0xff]  ;;  %v239_v49 = vld [vmem:[#allocation5 + $0x48] sm:$0xff] }
  0xc8   : > { %1242 = vmatprep.subr.mxu0 %v719_v24  ;;  %1300 = vmatpush2.msra.mxu1 %v874_v54  ;;  %v677_v24 = vld [vmem:[#allocation5 + $0xdf8] sm:$0xff]  ;;  %v570_v51 = vld [vmem:[#allocation5 + $0xaa0] sm:$0xff] }
  0xc9   : > { %1243 = vmatpush2.msra.mxu0 %v718_v27  ;;  %1301 = vmatprep.subr.mxu1 %v853_v57  ;;  %v676_v27 = vld [vmem:[#allocation5 + $0xdf0] sm:$0xff]  ;;  %v549_v54 = vld [vmem:[#allocation5 + $0x9f8] sm:$0xff]  ;;  %v899_v57 = vld [vmem:[#allocation5 + $0x14e8] sm:$0xff] }
  0xca   : > { %1244 = vmatprep.subr.mxu0 %v697_v30  ;;  %1302 = vmatpush2.msra.mxu1 %v852_v59  ;;  %v655_v30 = vld [vmem:[#allocation5 + $0xd48] sm:$0xff]  ;;  %v898_v59 = vld [vmem:[#allocation5 + $0x14e0] sm:$0xff] }
  0xcb   : > { %1245 = vmatpush2.msra.mxu0 %v696_v32  ;;  %1303 = vmatprep.subr.mxu1 %v831_v61  ;;  %v654_v32 = vld [vmem:[#allocation5 + $0xd40] sm:$0xff]  ;;  %v877_v61 = vld [vmem:[#allocation5 + $0x1438] sm:$0xff] }
  0xcc   : > { %1246 = vmatprep.subr.mxu0 %v675_v34  ;;  %1304 = vmatpush2.msra.mxu1 %v830_v62  ;;  %v633_v34 = vld [vmem:[#allocation5 + $0xc98] sm:$0xff]  ;;  %v876_v62 = vld [vmem:[#allocation5 + $0x1430] sm:$0xff] }
  0xcd   : > { %1247 = vmatpush2.msra.mxu0 %v674_v36  ;;  %1305 = vmatprep.subr.mxu1 %v809_v0  ;;  %v632_v36 = vld [vmem:[#allocation5 + $0xc90] sm:$0xff]  ;;  %v855_v0 = vld [vmem:[#allocation5 + $0x1388] sm:$0xff] }
  0xce   : > { %1248 = vmatprep.subr.mxu0 %v653_v39  ;;  %1306 = vmatpush2.msra.mxu1 %v808_v2  ;;  %v611_v39 = vld [vmem:[#allocation5 + $0xbe8] sm:$0xff]  ;;  %v854_v2 = vld [vmem:[#allocation5 + $0x1380] sm:$0xff] }
  0xcf   : > { %1249 = vmatpush2.msra.mxu0 %v652_v41  ;;  %1307 = vmatprep.subr.mxu1 %v787_v4  ;;  %v610_v41 = vld [vmem:[#allocation5 + $0xbe0] sm:$0xff]  ;;  %v833_v4 = vld [vmem:[#allocation5 + $0x12d8] sm:$0xff] }
  0xd0   : > { %1250 = vmatprep.subr.mxu0 %v631_v43  ;;  %1308 = vmatpush2.msra.mxu1 %v786_v6  ;;  %v589_v43 = vld [vmem:[#allocation5 + $0xb38] sm:$0xff]  ;;  %v832_v6 = vld [vmem:[#allocation5 + $0x12d0] sm:$0xff] }
  0xd1   : > { %1251 = vmatpush2.msra.mxu0 %v630_v45  ;;  %1309 = vmatprep.subr.mxu1 %v765_v8  ;;  %v588_v45 = vld [vmem:[#allocation5 + $0xb30] sm:$0xff]  ;;  %v811_v8 = vld [vmem:[#allocation5 + $0x1228] sm:$0xff] }
  0xd2   : > { %1252 = vmatprep.subr.mxu0 %v609_v47  ;;  %1310 = vmatpush2.msra.mxu1 %v764_v10  ;;  %v261_v47 = vld [vmem:[#allocation5 + $0xf8] sm:$0xff]  ;;  %v810_v10 = vld [vmem:[#allocation5 + $0x1220] sm:$0xff] }
  0xd3   : > { %1253 = vmatpush2.msra.mxu0 %v608_v48  ;;  %1311 = vmatprep.subr.mxu1 %v743_v12  ;;  %v260_v48 = vld [vmem:[#allocation5 + $0xf0] sm:$0xff]  ;;  %v789_v12 = vld [vmem:[#allocation5 + $0x1178] sm:$0xff] }
  0xd4   : > { %1254 = vmatprep.subr.mxu0 %v587_v50  ;;  %1312 = vmatpush2.msra.mxu1 %v742_v14  ;;  %v238_v50 = vld [vmem:[#allocation5 + $0x40] sm:$0xff]  ;;  %v788_v14 = vld [vmem:[#allocation5 + $0x1170] sm:$0xff] }
  0xd5   : > { %1255 = vmatpush2.msra.mxu0 %v586_v52  ;;  %1313 = vmatprep.subr.mxu1 %v721_v16  ;;  %v921_v52 = vld [vmem:[#allocation5 + $0x1598] sm:$0xff]  ;;  %v767_v16 = vld [vmem:[#allocation5 + $0x10c8] sm:$0xff] }
  0xd6   : > { %1257 = vmatmul.mubr.f32.vlgmr.msra.gmra.mxu0 %v2375_v53  ;;  %1334 = vmatprep.subr.mxu0 %v569_v55  ;;  %v920_v55 = vld [vmem:[#allocation5 + $0x1590] sm:$0xff] }
  0xd7   : > { %1335 = vmatpush1.msra.mxu0 %v568_v56  ;;  %1314 = vmatpush2.msra.mxu1 %v720_v18  ;;  %v548_v56 = vld [vmem:[#allocation5 + $0x9f0] sm:$0xff]  ;;  %v766_v18 = vld [vmem:[#allocation5 + $0x10c0] sm:$0xff] }
  0xd8   : > { %1336 = vmatprep.subr.mxu0 %v547_v58  ;;  %1315 = vmatprep.subr.mxu1 %v699_v20  ;;  %v527_v58 = vld [vmem:[#allocation5 + $0x948] sm:$0xff]  ;;  %v745_v20 = vld [vmem:[#allocation5 + $0x1018] sm:$0xff] }
  0xd9   : > { %1337 = vmatpush1.msra.mxu0 %v546_v60  ;;  %1316 = vmatpush2.msra.mxu1 %v698_v22  ;;  %v526_v60 = vld [vmem:[#allocation5 + $0x940] sm:$0xff]  ;;  %v744_v22 = vld [vmem:[#allocation5 + $0x1010] sm:$0xff] }
  0xda   : > { %1338 = vmatprep.subr.mxu0 %v525_v29  ;;  %1317 = vmatprep.subr.mxu1 %v677_v24  ;;  %v505_v29 = vld [vmem:[#allocation5 + $0x898] sm:$0xff]  ;;  %v723_v24 = vld [vmem:[#allocation5 + $0xf68] sm:$0xff] }
  0xdb   : > { %1339 = vmatpush1.msra.mxu0 %v524_v63  ;;  %1318 = vmatpush2.msra.mxu1 %v676_v27  ;;  %v504_v63 = vld [vmem:[#allocation5 + $0x890] sm:$0xff]  ;;  %v722_v27 = vld [vmem:[#allocation5 + $0xf60] sm:$0xff] }
  0xdc   : > { %1340 = vmatprep.subr.mxu0 %v503_v1  ;;  %1319 = vmatprep.subr.mxu1 %v655_v30  ;;  %v483_v1 = vld [vmem:[#allocation5 + $0x7e8] sm:$0xff]  ;;  %v701_v30 = vld [vmem:[#allocation5 + $0xeb8] sm:$0xff] }
  0xdd   : > { %1341 = vmatpush1.msra.mxu0 %v502_v3  ;;  %1320 = vmatpush2.msra.mxu1 %v654_v32  ;;  %v482_v3 = vld [vmem:[#allocation5 + $0x7e0] sm:$0xff]  ;;  %v700_v32 = vld [vmem:[#allocation5 + $0xeb0] sm:$0xff] }
  0xde   : > { %1342 = vmatprep.subr.mxu0 %v481_v5  ;;  %1321 = vmatprep.subr.mxu1 %v633_v34  ;;  %v461_v5 = vld [vmem:[#allocation5 + $0x738] sm:$0xff]  ;;  %v679_v34 = vld [vmem:[#allocation5 + $0xe08] sm:$0xff] }
  0xdf   : > { %1343 = vmatpush1.msra.mxu0 %v480_v7  ;;  %1322 = vmatpush2.msra.mxu1 %v632_v36  ;;  %v460_v7 = vld [vmem:[#allocation5 + $0x730] sm:$0xff]  ;;  %v678_v36 = vld [vmem:[#allocation5 + $0xe00] sm:$0xff] }
  0xe0   : > { %1344 = vmatprep.subr.mxu0 %v459_v9  ;;  %1323 = vmatprep.subr.mxu1 %v611_v39  ;;  %v439_v9 = vld [vmem:[#allocation5 + $0x688] sm:$0xff]  ;;  %v657_v39 = vld [vmem:[#allocation5 + $0xd58] sm:$0xff] }
  0xe1   : > { %1345 = vmatpush1.msra.mxu0 %v458_v11  ;;  %1324 = vmatpush2.msra.mxu1 %v610_v41  ;;  %v438_v11 = vld [vmem:[#allocation5 + $0x680] sm:$0xff]  ;;  %v656_v41 = vld [vmem:[#allocation5 + $0xd50] sm:$0xff] }
  0xe2   : > { %1346 = vmatprep.subr.mxu0 %v437_v13  ;;  %1325 = vmatprep.subr.mxu1 %v589_v43  ;;  %v417_v13 = vld [vmem:[#allocation5 + $0x5d8] sm:$0xff]  ;;  %v635_v43 = vld [vmem:[#allocation5 + $0xca8] sm:$0xff] }
  0xe3   : > { %1347 = vmatpush1.msra.mxu0 %v436_v15  ;;  %1326 = vmatpush2.msra.mxu1 %v588_v45  ;;  %v416_v15 = vld [vmem:[#allocation5 + $0x5d0] sm:$0xff]  ;;  %v634_v45 = vld [vmem:[#allocation5 + $0xca0] sm:$0xff] }
  0xe4   : > { %1348 = vmatprep.subr.mxu0 %v415_v17  ;;  %1327 = vmatprep.mubr.f32.mxu1 %v2371_v38  ;;  %v395_v17 = vld [vmem:[#allocation5 + $0x528] sm:$0xff] }
  0xe5   : > { %1349 = vmatpush1.msra.mxu0 %v414_v19  ;;  %1405 = vmatprep.subr.mxu1 %v571_v26  ;;  %v394_v19 = vld [vmem:[#allocation5 + $0x520] sm:$0xff]  ;;  %v241_v26 = vld [vmem:[#allocation5 + $0x58] sm:$0xff] }
  0xe6   : > { %1350 = vmatprep.subr.mxu0 %v393_v21  ;;  %1328 = vmatmul.mubr.f32.vlgmr.msra.gmra.mxu1 %v2375_v53  ;;  %v373_v21 = vld [vmem:[#allocation5 + $0x478] sm:$0xff] }
  0xe7   : > { %1351 = vmatpush1.msra.mxu0 %v392_v23  ;;  %1398 = vmatprep.mubr.f32.mxu0 %v2371_v38  ;;  %v372_v23 = vld [vmem:[#allocation5 + $0x470] sm:$0xff] }
  0xe8   : > { %1352 = vmatprep.subr.mxu0 %v371_v25  ;;  %1406 = vmatpush1.msra.mxu1 %v570_v51  ;;  %v351_v25 = vld [vmem:[#allocation5 + $0x3c8] sm:$0xff] }
  0xe9   : > { %1353 = vmatpush1.msra.mxu0 %v370_v28  ;;  %1407 = vmatprep.subr.mxu1 %v549_v54  ;;  %v350_v28 = vld [vmem:[#allocation5 + $0x3c0] sm:$0xff]  ;;  %v923_v51 = vld [vmem:[#allocation5 + $0x15a8] sm:$0xff] }
  0xea   : > { %1354 = vmatprep.subr.mxu0 %v349_v31  ;;  %1408 = vmatpush1.msra.mxu1 %v548_v56  ;;  %v329_v31 = vld [vmem:[#allocation5 + $0x318] sm:$0xff]  ;;  %v922_v54 = vld [vmem:[#allocation5 + $0x15a0] sm:$0xff]  ;;  %v572_v56 = vld [vmem:[#allocation5 + $0xab0] sm:$0xff] }
  0xeb   : > { %1355 = vmatpush1.msra.mxu0 %v348_v33  ;;  %1409 = vmatprep.subr.mxu1 %v527_v58  ;;  %v328_v33 = vld [vmem:[#allocation5 + $0x310] sm:$0xff]  ;;  %v551_v58 = vld [vmem:[#allocation5 + $0xa08] sm:$0xff] }
  0xec   : > { %1356 = vmatprep.subr.mxu0 %v327_v35  ;;  %1410 = vmatpush1.msra.mxu1 %v526_v60  ;;  %v307_v35 = vld [vmem:[#allocation5 + $0x268] sm:$0xff]  ;;  %v550_v60 = vld [vmem:[#allocation5 + $0xa00] sm:$0xff] }
  0xed   : > { %1357 = vmatpush1.msra.mxu0 %v326_v37  ;;  %1411 = vmatprep.subr.mxu1 %v505_v29  ;;  %v306_v37 = vld [vmem:[#allocation5 + $0x260] sm:$0xff]  ;;  %v529_v29 = vld [vmem:[#allocation5 + $0x958] sm:$0xff] }
  0xee   : > { %1358 = vmatprep.subr.mxu0 %v305_v40  ;;  %1412 = vmatpush1.msra.mxu1 %v504_v63  ;;  %v285_v40 = vld [vmem:[#allocation5 + $0x1b8] sm:$0xff]  ;;  %v528_v63 = vld [vmem:[#allocation5 + $0x950] sm:$0xff] }
  0xef   : > { %1359 = vmatpush1.msra.mxu0 %v304_v42  ;;  %1413 = vmatprep.subr.mxu1 %v483_v1  ;;  %v284_v42 = vld [vmem:[#allocation5 + $0x1b0] sm:$0xff]  ;;  %v507_v1 = vld [vmem:[#allocation5 + $0x8a8] sm:$0xff] }
  0xf0   : > { %1360 = vmatprep.subr.mxu0 %v283_v44  ;;  %1414 = vmatpush1.msra.mxu1 %v482_v3  ;;  %v263_v44 = vld [vmem:[#allocation5 + $0x108] sm:$0xff]  ;;  %v506_v3 = vld [vmem:[#allocation5 + $0x8a0] sm:$0xff] }
  0xf1   : > { %1361 = vmatpush1.msra.mxu0 %v282_v46  ;;  %1415 = vmatprep.subr.mxu1 %v461_v5  ;;  %v262_v46 = vld [vmem:[#allocation5 + $0x100] sm:$0xff]  ;;  %v485_v5 = vld [vmem:[#allocation5 + $0x7f8] sm:$0xff] }
  0xf2   : > { %1362 = vmatprep.subr.mxu0 %v261_v47  ;;  %1416 = vmatpush1.msra.mxu1 %v460_v7  ;;  %v613_v47 = vld [vmem:[#allocation5 + $0xbf8] sm:$0xff]  ;;  %v484_v7 = vld [vmem:[#allocation5 + $0x7f0] sm:$0xff] }
  0xf3   : > { %1363 = vmatpush1.msra.mxu0 %v260_v48  ;;  %1417 = vmatprep.subr.mxu1 %v439_v9  ;;  %v612_v48 = vld [vmem:[#allocation5 + $0xbf0] sm:$0xff]  ;;  %v463_v9 = vld [vmem:[#allocation5 + $0x748] sm:$0xff] }
  0xf4   : > { %1364 = vmatprep.subr.mxu0 %v239_v49  ;;  %1418 = vmatpush1.msra.mxu1 %v438_v11  ;;  %v240_v49 = vld [vmem:[#allocation5 + $0x50] sm:$0xff]  ;;  %v462_v11 = vld [vmem:[#allocation5 + $0x740] sm:$0xff] }
  0xf5   : > { %1365 = vmatpush1.msra.mxu0 %v238_v50  ;;  %1419 = vmatprep.subr.mxu1 %v417_v13  ;;  %v591_v50 = vld [vmem:[#allocation5 + $0xb48] sm:$0xff]  ;;  %v441_v13 = vld [vmem:[#allocation5 + $0x698] sm:$0xff] }
  0xf6   : > { %1366 = vmatprep.subr.mxu0 %v921_v52  ;;  %1420 = vmatpush1.msra.mxu1 %v416_v15  ;;  %v590_v52 = vld [vmem:[#allocation5 + $0xb40] sm:$0xff]  ;;  %v440_v15 = vld [vmem:[#allocation5 + $0x690] sm:$0xff] }
  0xf7   : > { %1367 = vmatpush2.msra.mxu0 %v920_v55  ;;  %1421 = vmatprep.subr.mxu1 %v395_v17  ;;  %v573_v55 = vld [vmem:[#allocation5 + $0xab8] sm:$0xff]  ;;  %v419_v17 = vld [vmem:[#allocation5 + $0x5e8] sm:$0xff] }
  0xf8   : > { %1368 = vmatprep.subr.mxu0 %v899_v57  ;;  %1422 = vmatpush1.msra.mxu1 %v394_v19  ;;  %v901_v57 = vld [vmem:[#allocation5 + $0x14f8] sm:$0xff]  ;;  %v418_v19 = vld [vmem:[#allocation5 + $0x5e0] sm:$0xff] }
  0xf9   : > { %1369 = vmatpush2.msra.mxu0 %v898_v59  ;;  %1423 = vmatprep.subr.mxu1 %v373_v21  ;;  %v900_v59 = vld [vmem:[#allocation5 + $0x14f0] sm:$0xff]  ;;  %v397_v21 = vld [vmem:[#allocation5 + $0x538] sm:$0xff] }
  0xfa   : > { %1370 = vmatprep.subr.mxu0 %v877_v61  ;;  %1424 = vmatpush1.msra.mxu1 %v372_v23  ;;  %v879_v61 = vld [vmem:[#allocation5 + $0x1448] sm:$0xff]  ;;  %v396_v23 = vld [vmem:[#allocation5 + $0x530] sm:$0xff] }
  0xfb   : > { %1371 = vmatpush2.msra.mxu0 %v876_v62  ;;  %1425 = vmatprep.subr.mxu1 %v351_v25  ;;  %v878_v62 = vld [vmem:[#allocation5 + $0x1440] sm:$0xff]  ;;  %v375_v25 = vld [vmem:[#allocation5 + $0x488] sm:$0xff] }
  0xfc   : > { %1372 = vmatprep.subr.mxu0 %v855_v0  ;;  %1426 = vmatpush1.msra.mxu1 %v350_v28  ;;  %v857_v0 = vld [vmem:[#allocation5 + $0x1398] sm:$0xff]  ;;  %v374_v28 = vld [vmem:[#allocation5 + $0x480] sm:$0xff] }
  0xfd   : > { %1373 = vmatpush2.msra.mxu0 %v854_v2  ;;  %1427 = vmatprep.subr.mxu1 %v329_v31  ;;  %v856_v2 = vld [vmem:[#allocation5 + $0x1390] sm:$0xff]  ;;  %v353_v31 = vld [vmem:[#allocation5 + $0x3d8] sm:$0xff] }
  0xfe   : > { %1374 = vmatprep.subr.mxu0 %v833_v4  ;;  %1428 = vmatpush1.msra.mxu1 %v328_v33  ;;  %v835_v4 = vld [vmem:[#allocation5 + $0x12e8] sm:$0xff]  ;;  %v352_v33 = vld [vmem:[#allocation5 + $0x3d0] sm:$0xff] }
  0xff   : > { %1375 = vmatpush2.msra.mxu0 %v832_v6  ;;  %1429 = vmatprep.subr.mxu1 %v307_v35  ;;  %v834_v6 = vld [vmem:[#allocation5 + $0x12e0] sm:$0xff]  ;;  %v331_v35 = vld [vmem:[#allocation5 + $0x328] sm:$0xff] }
 0x100   : > { %1376 = vmatprep.subr.mxu0 %v811_v8  ;;  %1430 = vmatpush1.msra.mxu1 %v306_v37  ;;  %v813_v8 = vld [vmem:[#allocation5 + $0x1238] sm:$0xff]  ;;  %v330_v37 = vld [vmem:[#allocation5 + $0x320] sm:$0xff] }
 0x101   : > { %1377 = vmatpush2.msra.mxu0 %v810_v10  ;;  %1431 = vmatprep.subr.mxu1 %v285_v40  ;;  %v812_v10 = vld [vmem:[#allocation5 + $0x1230] sm:$0xff]  ;;  %v309_v40 = vld [vmem:[#allocation5 + $0x278] sm:$0xff] }
 0x102   : > { %1378 = vmatprep.subr.mxu0 %v789_v12  ;;  %1432 = vmatpush1.msra.mxu1 %v284_v42  ;;  %v791_v12 = vld [vmem:[#allocation5 + $0x1188] sm:$0xff]  ;;  %v308_v42 = vld [vmem:[#allocation5 + $0x270] sm:$0xff] }
 0x103   : > { %1379 = vmatpush2.msra.mxu0 %v788_v14  ;;  %1433 = vmatprep.subr.mxu1 %v263_v44  ;;  %v790_v14 = vld [vmem:[#allocation5 + $0x1180] sm:$0xff]  ;;  %v287_v44 = vld [vmem:[#allocation5 + $0x1c8] sm:$0xff] }
 0x104   : > { %1380 = vmatprep.subr.mxu0 %v767_v16  ;;  %1434 = vmatpush1.msra.mxu1 %v262_v46  ;;  %v769_v16 = vld [vmem:[#allocation5 + $0x10d8] sm:$0xff]  ;;  %v286_v46 = vld [vmem:[#allocation5 + $0x1c0] sm:$0xff] }
 0x105   : > { %1381 = vmatpush2.msra.mxu0 %v766_v18  ;;  %1435 = vmatprep.subr.mxu1 %v241_v26  ;;  %v768_v18 = vld [vmem:[#allocation5 + $0x10d0] sm:$0xff]  ;;  %v265_v26 = vld [vmem:[#allocation5 + $0x118] sm:$0xff] }
 0x106   : > { %1382 = vmatprep.subr.mxu0 %v745_v20  ;;  %1436 = vmatpush1.msra.mxu1 %v240_v49  ;;  %v747_v20 = vld [vmem:[#allocation5 + $0x1028] sm:$0xff]  ;;  %v264_v49 = vld [vmem:[#allocation5 + $0x110] sm:$0xff] }
 0x107   : > { %1383 = vmatpush2.msra.mxu0 %v744_v22  ;;  %1437 = vmatprep.subr.mxu1 %v923_v51  ;;  %v746_v22 = vld [vmem:[#allocation5 + $0x1020] sm:$0xff]  ;;  %v243_v51 = vld [vmem:[#allocation5 + $0x68] sm:$0xff] }
 0x108   : > { %1384 = vmatprep.subr.mxu0 %v723_v24  ;;  %1438 = vmatpush2.msra.mxu1 %v922_v54  ;;  %v725_v24 = vld [vmem:[#allocation5 + $0xf78] sm:$0xff]  ;;  %v242_v54 = vld [vmem:[#allocation5 + $0x60] sm:$0xff] }
 0x109   : > { %1385 = vmatpush2.msra.mxu0 %v722_v27  ;;  %1439 = vmatprep.subr.mxu1 %v901_v57  ;;  %v724_v27 = vld [vmem:[#allocation5 + $0xf70] sm:$0xff] }
 0x10a   : > { %1386 = vmatprep.subr.mxu0 %v701_v30  ;;  %1440 = vmatpush2.msra.mxu1 %v900_v59  ;;  %v703_v30 = vld [vmem:[#allocation5 + $0xec8] sm:$0xff]  ;;  %v924_v57 = vld [vmem:[#allocation5 + $0x15b0] sm:$0xff]  ;;  %v902_v59 = vld [vmem:[#allocation5 + $0x1500] sm:$0xff] }
 0x10b   : > { %1387 = vmatpush2.msra.mxu0 %v700_v32  ;;  %1441 = vmatprep.subr.mxu1 %v879_v61  ;;  %v702_v32 = vld [vmem:[#allocation5 + $0xec0] sm:$0xff]  ;;  %v881_v61 = vld [vmem:[#allocation5 + $0x1458] sm:$0xff] }
 0x10c   : > { %1388 = vmatprep.subr.mxu0 %v679_v34  ;;  %1442 = vmatpush2.msra.mxu1 %v878_v62  ;;  %v681_v34 = vld [vmem:[#allocation5 + $0xe18] sm:$0xff]  ;;  %v880_v62 = vld [vmem:[#allocation5 + $0x1450] sm:$0xff] }
 0x10d   : > { %1389 = vmatpush2.msra.mxu0 %v678_v36  ;;  %1443 = vmatprep.subr.mxu1 %v857_v0  ;;  %v680_v36 = vld [vmem:[#allocation5 + $0xe10] sm:$0xff]  ;;  %v859_v0 = vld [vmem:[#allocation5 + $0x13a8] sm:$0xff] }
 0x10e   : > { %1390 = vmatprep.subr.mxu0 %v657_v39  ;;  %1444 = vmatpush2.msra.mxu1 %v856_v2  ;;  %v659_v39 = vld [vmem:[#allocation5 + $0xd68] sm:$0xff]  ;;  %v858_v2 = vld [vmem:[#allocation5 + $0x13a0] sm:$0xff] }
 0x10f   : > { %1391 = vmatpush2.msra.mxu0 %v656_v41  ;;  %1445 = vmatprep.subr.mxu1 %v835_v4  ;;  %v658_v41 = vld [vmem:[#allocation5 + $0xd60] sm:$0xff]  ;;  %v837_v4 = vld [vmem:[#allocation5 + $0x12f8] sm:$0xff] }
 0x110   : > { %1392 = vmatprep.subr.mxu0 %v635_v43  ;;  %1446 = vmatpush2.msra.mxu1 %v834_v6  ;;  %v637_v43 = vld [vmem:[#allocation5 + $0xcb8] sm:$0xff]  ;;  %v836_v6 = vld [vmem:[#allocation5 + $0x12f0] sm:$0xff] }
 0x111   : > { %1393 = vmatpush2.msra.mxu0 %v634_v45  ;;  %1447 = vmatprep.subr.mxu1 %v813_v8  ;;  %v636_v45 = vld [vmem:[#allocation5 + $0xcb0] sm:$0xff]  ;;  %v815_v8 = vld [vmem:[#allocation5 + $0x1248] sm:$0xff] }
 0x112   : > { %1394 = vmatprep.subr.mxu0 %v613_v47  ;;  %1448 = vmatpush2.msra.mxu1 %v812_v10  ;;  %v615_v47 = vld [vmem:[#allocation5 + $0xc08] sm:$0xff]  ;;  %v814_v10 = vld [vmem:[#allocation5 + $0x1240] sm:$0xff] }
 0x113   : > { %1395 = vmatpush2.msra.mxu0 %v612_v48  ;;  %1449 = vmatprep.subr.mxu1 %v791_v12  ;;  %v614_v48 = vld [vmem:[#allocation5 + $0xc00] sm:$0xff]  ;;  %v793_v12 = vld [vmem:[#allocation5 + $0x1198] sm:$0xff] }
 0x114   : > { %1396 = vmatprep.subr.mxu0 %v591_v50  ;;  %1450 = vmatpush2.msra.mxu1 %v790_v14  ;;  %v593_v50 = vld [vmem:[#allocation5 + $0xb58] sm:$0xff]  ;;  %v792_v14 = vld [vmem:[#allocation5 + $0x1190] sm:$0xff] }
 0x115   : > { %1397 = vmatpush2.msra.mxu0 %v590_v52  ;;  %1451 = vmatprep.subr.mxu1 %v769_v16  ;;  %v592_v52 = vld [vmem:[#allocation5 + $0xb50] sm:$0xff]  ;;  %v771_v16 = vld [vmem:[#allocation5 + $0x10e8] sm:$0xff] }
 0x116   : > { %1399 = vmatmul.mubr.f32.vlgmr.msra.gmra.mxu0 %v2375_v53  ;;  %1476 = vmatprep.subr.mxu0 %v573_v55  ;;  %v925_v55 = vld [vmem:[#allocation5 + $0x15b8] sm:$0xff] }
 0x117   : > { %1477 = vmatpush1.msra.mxu0 %v572_v56  ;;  %1452 = vmatpush2.msra.mxu1 %v768_v18  ;;  %v575_v56 = vld [vmem:[#allocation5 + $0xac8] sm:$0xff]  ;;  %v770_v18 = vld [vmem:[#allocation5 + $0x10e0] sm:$0xff] }
 0x118   : > { %1478 = vmatprep.subr.mxu0 %v551_v58  ;;  %1453 = vmatprep.subr.mxu1 %v747_v20  ;;  %v903_v58 = vld [vmem:[#allocation5 + $0x1508] sm:$0xff]  ;;  %v749_v20 = vld [vmem:[#allocation5 + $0x1038] sm:$0xff] }
 0x119   : > { %1479 = vmatpush1.msra.mxu0 %v550_v60  ;;  %1454 = vmatpush2.msra.mxu1 %v746_v22  ;;  %v574_v60 = vld [vmem:[#allocation5 + $0xac0] sm:$0xff]  ;;  %v748_v22 = vld [vmem:[#allocation5 + $0x1030] sm:$0xff] }
 0x11a   : > { %1480 = vmatprep.subr.mxu0 %v529_v29  ;;  %1455 = vmatprep.subr.mxu1 %v725_v24  ;;  %v553_v29 = vld [vmem:[#allocation5 + $0xa18] sm:$0xff]  ;;  %v727_v24 = vld [vmem:[#allocation5 + $0xf88] sm:$0xff] }
 0x11b   : > { %1481 = vmatpush1.msra.mxu0 %v528_v63  ;;  %1456 = vmatpush2.msra.mxu1 %v724_v27  ;;  %v552_v63 = vld [vmem:[#allocation5 + $0xa10] sm:$0xff]  ;;  %v726_v27 = vld [vmem:[#allocation5 + $0xf80] sm:$0xff] }
 0x11c   : > { %1482 = vmatprep.subr.mxu0 %v507_v1  ;;  %1457 = vmatprep.subr.mxu1 %v703_v30  ;;  %v531_v1 = vld [vmem:[#allocation5 + $0x968] sm:$0xff]  ;;  %v705_v30 = vld [vmem:[#allocation5 + $0xed8] sm:$0xff] }
 0x11d   : > { %1483 = vmatpush1.msra.mxu0 %v506_v3  ;;  %1458 = vmatpush2.msra.mxu1 %v702_v32  ;;  %v530_v3 = vld [vmem:[#allocation5 + $0x960] sm:$0xff]  ;;  %v377_v32 = vld [vmem:[#allocation5 + $0x498] sm:$0xff] }
 0x11e   : > { %1484 = vmatprep.subr.mxu0 %v485_v5  ;;  %1459 = vmatprep.subr.mxu1 %v681_v34  ;;  %v509_v5 = vld [vmem:[#allocation5 + $0x8b8] sm:$0xff]  ;;  %v376_v34 = vld [vmem:[#allocation5 + $0x490] sm:$0xff] }
 0x11f   : > { %1485 = vmatpush1.msra.mxu0 %v484_v7  ;;  %1460 = vmatpush2.msra.mxu1 %v680_v36  ;;  %v508_v7 = vld [vmem:[#allocation5 + $0x8b0] sm:$0xff]  ;;  %v355_v36 = vld [vmem:[#allocation5 + $0x3e8] sm:$0xff] }
 0x120   : > { %1486 = vmatprep.subr.mxu0 %v463_v9  ;;  %1461 = vmatprep.subr.mxu1 %v659_v39  ;;  %v487_v9 = vld [vmem:[#allocation5 + $0x808] sm:$0xff]  ;;  %v354_v39 = vld [vmem:[#allocation5 + $0x3e0] sm:$0xff] }
 0x121   : > { %1487 = vmatpush1.msra.mxu0 %v462_v11  ;;  %1462 = vmatpush2.msra.mxu1 %v658_v41  ;;  %v486_v11 = vld [vmem:[#allocation5 + $0x800] sm:$0xff] }
 0x122   : > { %1488 = vmatprep.subr.mxu0 %v441_v13  ;;  %1463 = vmatprep.subr.mxu1 %v637_v43  ;;  %v465_v13 = vld [vmem:[#allocation5 + $0x758] sm:$0xff]  ;;  %v660_v43 = vld [vmem:[#allocation5 + $0xd70] sm:$0xff] }
 0x123   : > { %1489 = vmatpush1.msra.mxu0 %v440_v15  ;;  %1464 = vmatpush2.msra.mxu1 %v636_v45  ;;  %v464_v15 = vld [vmem:[#allocation5 + $0x750] sm:$0xff]  ;;  %v639_v45 = vld [vmem:[#allocation5 + $0xcc8] sm:$0xff] }
 0x124   : > { %1490 = vmatprep.subr.mxu0 %v419_v17  ;;  %1465 = vmatprep.subr.mxu1 %v615_v47  ;;  %v443_v17 = vld [vmem:[#allocation5 + $0x6a8] sm:$0xff]  ;;  %v638_v47 = vld [vmem:[#allocation5 + $0xcc0] sm:$0xff] }
 0x125   : > { %1491 = vmatpush1.msra.mxu0 %v418_v19  ;;  %1466 = vmatpush2.msra.mxu1 %v614_v48  ;;  %v442_v19 = vld [vmem:[#allocation5 + $0x6a0] sm:$0xff]  ;;  %v617_v48 = vld [vmem:[#allocation5 + $0xc18] sm:$0xff] }
 0x126   : > { %1492 = vmatprep.subr.mxu0 %v397_v21  ;;  %1467 = vmatprep.subr.mxu1 %v593_v50  ;;  %v421_v21 = vld [vmem:[#allocation5 + $0x5f8] sm:$0xff] }
 0x127   : > { %1493 = vmatpush1.msra.mxu0 %v396_v23  ;;  %1468 = vmatpush2.msra.mxu1 %v592_v52  ;;  %v420_v23 = vld [vmem:[#allocation5 + $0x5f0] sm:$0xff]  ;;  %v289_v50 = vld [vmem:[#allocation5 + $0x1d8] sm:$0xff]  ;;  %v2394_v52 = vld [vmem:[#allocation7] sm:$0xff] }
 0x128   : > { %1494 = vmatprep.subr.mxu0 %v375_v25  ;;  %1469 = vmatprep.mubr.f32.mxu1 %v2371_v38  ;;  %v399_v25 = vld [vmem:[#allocation5 + $0x548] sm:$0xff] }
 0x129   : > { %1495 = vmatpush1.msra.mxu0 %v374_v28  ;;  %1547 = vmatprep.subr.mxu1 %v575_v56  ;;  %v398_v28 = vld [vmem:[#allocation5 + $0x540] sm:$0xff] }
 0x12a   : > { %1496 = vmatprep.subr.mxu0 %v353_v31  ;;  %1470 = vmatmul.mubr.f32.vlgmr.msra.gmra.mxu1 %v2375_v53  ;;  %v940_v31 = vlaneseq }
 0x12b   : > { %1497 = vmatpush1.msra.mxu0 %v352_v33  ;;  %1540 = vmatprep.mubr.f32.mxu0 %v2371_v38  ;;  %v704_v33 = vld [vmem:[#allocation5 + $0xed0] sm:$0xff] }
 0x12c   : > { %1498 = vmatprep.subr.mxu0 %v331_v35  ;;  %1548 = vmatpush1.msra.mxu1 %v574_v60  ;;  %v683_v35 = vld [vmem:[#allocation5 + $0xe28] sm:$0xff]  ;;  %v2389_v41 = vshrl.u32 %v940_v31, 7  ;;  %v816_v31 = vld [vmem:[#allocation5 + $0x1250] sm:$0xff] }
 0x12d   : > { %1499 = vmatpush1.msra.mxu0 %v330_v37  ;;  %1549 = vmatprep.subr.mxu1 %v553_v29  ;;  %v682_v37 = vld [vmem:[#allocation5 + $0xe20] sm:$0xff]  ;;  %v576_v29 = vld [vmem:[#allocation5 + $0xad0] sm:$0xff] }
 0x12e   : > { %1500 = vmatprep.subr.mxu0 %v309_v40  ;;  %1550 = vmatpush1.msra.mxu1 %v552_v63  ;;  %v661_v40 = vld [vmem:[#allocation5 + $0xd78] sm:$0xff]  ;;  %v2397_v56 = vsub.s32 1, %v2389_v41 }
 0x12f   : > { %1501 = vmatpush1.msra.mxu0 %v308_v42  ;;  %1551 = vmatprep.subr.mxu1 %v531_v1  ;;  %v333_v42 = vld [vmem:[#allocation5 + $0x338] sm:$0xff]  ;;  %v244_v1 = vld [vmem:[#allocation5 + $0x70] sm:$0xff] }
 0x130   : > { %1502 = vmatprep.subr.mxu0 %v287_v44  ;;  %1552 = vmatpush1.msra.mxu1 %v530_v3  ;;  %v332_v44 = vld [vmem:[#allocation5 + $0x330] sm:$0xff]  ;;  %v947_v63 = vrot.slane %v2394_v52, %v2397_v56  ;;  %v554_v3 = vld [vmem:[#allocation5 + $0xa20] sm:$0xff] }
 0x131   : > { %1503 = vmatpush1.msra.mxu0 %v286_v46  ;;  %1553 = vmatprep.subr.mxu1 %v509_v5  ;;  %v311_v46 = vld [vmem:[#allocation5 + $0x288] sm:$0xff] }
 0x132   : > { %1504 = vmatprep.subr.mxu0 %v265_v26  ;;  %1554 = vmatpush1.msra.mxu1 %v508_v7  ;;  %v310_v26 = vld [vmem:[#allocation5 + $0x280] sm:$0xff] }
 0x133   : > { %1505 = vmatpush1.msra.mxu0 %v264_v49  ;;  %1555 = vmatprep.subr.mxu1 %v487_v9  ;;  %v2392_v49 = vsub.s32 0, %v2389_v41  ;;  %v926_v7 = vld [vmem:[#allocation5 + $0x15c0] sm:$0xff]  ;;  %v532_v9 = vld [vmem:[#allocation5 + $0x970] sm:$0xff] }
 0x134   : > { %1506 = vmatprep.subr.mxu0 %v243_v51  ;;  %1556 = vmatpush1.msra.mxu1 %v486_v11  ;;  %v616_v51 = vld [vmem:[#allocation5 + $0xc10] sm:$0xff] }
 0x135   : > { %1507 = vmatpush1.msra.mxu0 %v242_v54  ;;  %1557 = vmatprep.subr.mxu1 %v465_v13  ;;  %v288_v54 = vld [vmem:[#allocation5 + $0x1d0] sm:$0xff]  ;;  %v943_v60 = vrot.slane %v2394_v52, %v2392_v49 }
 0x136   : > { %1508 = vmatprep.subr.mxu0 %v925_v55  ;;  %1558 = vmatpush1.msra.mxu1 %v464_v15  ;;  %v595_v55 = vld [vmem:[#allocation5 + $0xb68] sm:$0xff]  ;;  %v904_v13 = vld [vmem:[#allocation5 + $0x1510] sm:$0xff] }
 0x137   : > { %1509 = vmatpush2.msra.mxu0 %v924_v57  ;;  %1559 = vmatprep.subr.mxu1 %v443_v17  ;;  %v267_v57 = vld [vmem:[#allocation5 + $0x128] sm:$0xff]  ;;  %v882_v17 = vld [vmem:[#allocation5 + $0x1460] sm:$0xff] }
 0x138   : > { %1510 = vmatprep.subr.mxu0 %v903_v58  ;;  %1560 = vmatpush1.msra.mxu1 %v442_v19  ;;  %v594_v58 = vld [vmem:[#allocation5 + $0xb60] sm:$0xff]  ;;  %v883_v15 = vld [vmem:[#allocation5 + $0x1468] sm:$0xff]  ;;  %v861_v19 = vld [vmem:[#allocation5 + $0x13b8] sm:$0xff] }
 0x139   : > { %1511 = vmatpush2.msra.mxu0 %v902_v59  ;;  %1561 = vmatprep.subr.mxu1 %v421_v21  ;;  %v266_v59 = vld [vmem:[#allocation5 + $0x120] sm:$0xff]  ;;  %v860_v21 = vld [vmem:[#allocation5 + $0x13b0] sm:$0xff] }
 0x13a   : > { %1512 = vmatprep.subr.mxu0 %v881_v61  ;;  %1562 = vmatpush1.msra.mxu1 %v420_v23  ;;  %v577_v61 = vld [vmem:[#allocation5 + $0xad8] sm:$0xff]  ;;  %v839_v23 = vld [vmem:[#allocation5 + $0x1308] sm:$0xff] }
 0x13b   : > { %1513 = vmatpush2.msra.mxu0 %v880_v62  ;;  %1563 = vmatprep.subr.mxu1 %v399_v25  ;;  %v245_v62 = vld [vmem:[#allocation5 + $0x78] sm:$0xff]  ;;  %v838_v25 = vld [vmem:[#allocation5 + $0x1300] sm:$0xff] }
 0x13c   : > { %1514 = vmatprep.subr.mxu0 %v859_v0  ;;  %1564 = vmatpush1.msra.mxu1 %v398_v28  ;;  %v555_v0 = vld [vmem:[#allocation5 + $0xa28] sm:$0xff]  ;;  %v817_v28 = vld [vmem:[#allocation5 + $0x1258] sm:$0xff] }
 0x13d   : > { %1515 = vmatpush2.msra.mxu0 %v858_v2  ;;  %1565 = vmatprep.subr.mxu1 %v377_v32  ;;  %v422_v32 = vld [vmem:[#allocation5 + $0x600] sm:$0xff] }
 0x13e   : > { %1516 = vmatprep.subr.mxu0 %v837_v4  ;;  %1566 = vmatpush1.msra.mxu1 %v376_v34  ;;  %v927_v4 = vld [vmem:[#allocation5 + $0x15c8] sm:$0xff]  ;;  %v401_v34 = vld [vmem:[#allocation5 + $0x558] sm:$0xff] }
 0x13f   : > { %1517 = vmatpush2.msra.mxu0 %v836_v6  ;;  %1567 = vmatprep.subr.mxu1 %v355_v36  ;;  %v533_v6 = vld [vmem:[#allocation5 + $0x978] sm:$0xff]  ;;  %v400_v36 = vld [vmem:[#allocation5 + $0x550] sm:$0xff] }
 0x140   : > { %1518 = vmatprep.subr.mxu0 %v815_v8  ;;  %1568 = vmatpush1.msra.mxu1 %v354_v39  ;;  %v379_v39 = vld [vmem:[#allocation5 + $0x4a8] sm:$0xff] }
 0x141   : > { %1519 = vmatpush2.msra.mxu0 %v814_v10  ;;  %1569 = vmatprep.subr.mxu1 %v333_v42  ;;  %v905_v10 = vld [vmem:[#allocation5 + $0x1518] sm:$0xff]  ;;  %v378_v42 = vld [vmem:[#allocation5 + $0x4a0] sm:$0xff] }
 0x142   : > { %1520 = vmatprep.subr.mxu0 %v793_v12  ;;  %1570 = vmatpush1.msra.mxu1 %v332_v44  ;;  %v511_v12 = vld [vmem:[#allocation5 + $0x8c8] sm:$0xff]  ;;  %v357_v44 = vld [vmem:[#allocation5 + $0x3f8] sm:$0xff] }
 0x143   : > { %1521 = vmatpush2.msra.mxu0 %v792_v14  ;;  %1571 = vmatprep.subr.mxu1 %v311_v46  ;;  %v510_v14 = vld [vmem:[#allocation5 + $0x8c0] sm:$0xff]  ;;  %v356_v46 = vld [vmem:[#allocation5 + $0x3f0] sm:$0xff] }
 0x144   : > { %1522 = vmatprep.subr.mxu0 %v771_v16  ;;  %1572 = vmatpush1.msra.mxu1 %v310_v26  ;;  %v489_v16 = vld [vmem:[#allocation5 + $0x818] sm:$0xff]  ;;  %v2412_v26 = vsub.s32 2, %v2389_v41 }
 0x145   : > { %1523 = vmatpush2.msra.mxu0 %v770_v18  ;;  %1573 = vmatprep.subr.mxu1 %v289_v50  ;;  %v488_v18 = vld [vmem:[#allocation5 + $0x810] sm:$0xff] }
 0x146   : > { %1524 = vmatprep.subr.mxu0 %v749_v20  ;;  %1574 = vmatpush1.msra.mxu1 %v288_v54  ;;  %v467_v20 = vld [vmem:[#allocation5 + $0x768] sm:$0xff]  ;;  %v728_v50 = vld [vmem:[#allocation5 + $0xf90] sm:$0xff] }
 0x147   : > { %1525 = vmatpush2.msra.mxu0 %v748_v22  ;;  %1575 = vmatprep.subr.mxu1 %v267_v57  ;;  %v466_v22 = vld [vmem:[#allocation5 + $0x760] sm:$0xff]  ;;  %v707_v54 = vld [vmem:[#allocation5 + $0xee8] sm:$0xff]  ;;  %v313_v57 = vld [vmem:[#allocation5 + $0x298] sm:$0xff] }
 0x148   : > { %1526 = vmatprep.subr.mxu0 %v727_v24  ;;  %1576 = vmatpush1.msra.mxu1 %v266_v59  ;;  %v445_v24 = vld [vmem:[#allocation5 + $0x6b8] sm:$0xff]  ;;  %v312_v59 = vld [vmem:[#allocation5 + $0x290] sm:$0xff] }
 0x149   : > { %1527 = vmatpush2.msra.mxu0 %v726_v27  ;;  %1577 = vmatprep.subr.mxu1 %v245_v62  ;;  %v444_v27 = vld [vmem:[#allocation5 + $0x6b0] sm:$0xff] }
 0x14a   : > { %1528 = vmatprep.subr.mxu0 %v705_v30  ;;  %1578 = vmatpush1.msra.mxu1 %v244_v1  ;;  %v423_v30 = vld [vmem:[#allocation5 + $0x608] sm:$0xff]  ;;  %v684_v62 = vld [vmem:[#allocation5 + $0xe30] sm:$0xff] }
 0x14b   : > { %1529 = vmatpush2.msra.mxu0 %v704_v33  ;;  %1579 = vmatprep.subr.mxu1 %v927_v4  ;;  %v795_v33 = vld [vmem:[#allocation5 + $0x11a8] sm:$0xff] }
 0x14c   : > { %1530 = vmatprep.subr.mxu0 %v683_v35  ;;  %1580 = vmatpush2.msra.mxu1 %v926_v7  ;;  %v794_v35 = vld [vmem:[#allocation5 + $0x11a0] sm:$0xff] }
 0x14d   : > { %1531 = vmatpush2.msra.mxu0 %v682_v37  ;;  %1581 = vmatprep.subr.mxu1 %v905_v10  ;;  %v773_v37 = vld [vmem:[#allocation5 + $0x10f8] sm:$0xff] }
 0x14e   : > { %1532 = vmatprep.subr.mxu0 %v661_v40  ;;  %1582 = vmatpush2.msra.mxu1 %v904_v13  ;;  %v772_v40 = vld [vmem:[#allocation5 + $0x10f0] sm:$0xff] }
 0x14f   : > { %1533 = vmatpush2.msra.mxu0 %v660_v43  ;;  %1583 = vmatprep.subr.mxu1 %v883_v15  ;;  %v751_v43 = vld [vmem:[#allocation5 + $0x1048] sm:$0xff]  ;;  %v618_v15 = vld [vmem:[#allocation5 + $0xc20] sm:$0xff] }
 0x150   : > { %1534 = vmatprep.subr.mxu0 %v639_v45  ;;  %1584 = vmatpush2.msra.mxu1 %v882_v17  ;;  %v750_v45 = vld [vmem:[#allocation5 + $0x1040] sm:$0xff]  ;;  %v597_v17 = vld [vmem:[#allocation5 + $0xb78] sm:$0xff] }
 0x151   : > { %1535 = vmatpush2.msra.mxu0 %v638_v47  ;;  %1585 = vmatprep.subr.mxu1 %v861_v19  ;;  %v729_v47 = vld [vmem:[#allocation5 + $0xf98] sm:$0xff]  ;;  %v596_v19 = vld [vmem:[#allocation5 + $0xb70] sm:$0xff] }
 0x152   : > { %1536 = vmatprep.subr.mxu0 %v617_v48  ;;  %1586 = vmatpush2.msra.mxu1 %v860_v21  ;;  %v335_v48 = vld [vmem:[#allocation5 + $0x348] sm:$0xff]  ;;  %v885_v21 = vld [vmem:[#allocation5 + $0x1478] sm:$0xff] }
 0x153   : > { %1537 = vmatpush2.msra.mxu0 %v616_v51  ;;  %1587 = vmatprep.subr.mxu1 %v839_v23  ;;  %v334_v51 = vld [vmem:[#allocation5 + $0x340] sm:$0xff]  ;;  %v884_v23 = vld [vmem:[#allocation5 + $0x1470] sm:$0xff] }
 0x154   : > { %1538 = vmatprep.subr.mxu0 %v595_v55  ;;  %1588 = vmatpush2.msra.mxu1 %v838_v25  ;;  %v2415_v55 = vsub.s32 3, %v2389_v41  ;;  %v862_v25 = vld [vmem:[#allocation5 + $0x13c0] sm:$0xff] }
 0x155   : > { %1539 = vmatpush2.msra.mxu0 %v594_v58  ;;  %1589 = vmatprep.subr.mxu1 %v817_v28  ;;  %v706_v58 = vld [vmem:[#allocation5 + $0xee0] sm:$0xff]  ;;  %v841_v28 = vld [vmem:[#allocation5 + $0x1318] sm:$0xff] }
 0x156   : > { %v1116_v2 = vpop.f32.mrf.mxu0  ;;  %1541 = vmatmul.mubr.f32.vlgmr.msra.gmra.mxu0 %v2375_v53  ;;  %1618 = vmatprep.subr.mxu0 %v577_v61  ;;  %v951_v61 = vrot.slane %v2394_v52, %v2412_v26  ;;  %v955_v1 = vrot.slane %v2394_v52, %v2415_v55 }
 0x157   : > { %v1117_v5 = vadd.f32 %v1116_v2, %v943_v60  ;;  %1619 = vmatpush1.msra.mxu0 %v576_v29  ;;  %1590 = vmatpush2.msra.mxu1 %v816_v31  ;;  %v685_v60 = vld [vmem:[#allocation5 + $0xe38] sm:$0xff]  ;;  %v291_v29 = vld [vmem:[#allocation5 + $0x1e8] sm:$0xff]  ;;  %v840_v31 = vld [vmem:[#allocation5 + $0x1310] sm:$0xff] }
 0x158   : > { %v1118_v8 = vpop.f32.mrf.mxu0  ;;  %1620 = vmatprep.subr.mxu0 %v555_v0  ;;  %1591 = vmatprep.subr.mxu1 %v795_v33  ;;  %v663_v0 = vld [vmem:[#allocation5 + $0xd88] sm:$0xff]  ;;  %v269_v2 = vld [vmem:[#allocation5 + $0x138] sm:$0xff] }
 0x159   : > { %1831 = vst [vmem:[%s2407_s20] sm:$0xff] %v1117_v5  ;;  %v1119_v11 = vadd.f32 %v1118_v8, %v947_v63  ;;  %1621 = vmatpush1.msra.mxu0 %v554_v3  ;;  %1592 = vmatpush2.msra.mxu1 %v794_v35  ;;  %v290_v63 = vld [vmem:[#allocation5 + $0x1e0] sm:$0xff]  ;;  %v268_v5 = vld [vmem:[#allocation5 + $0x130] sm:$0xff]  ;;  %v247_v8 = vld [vmem:[#allocation5 + $0x88] sm:$0xff] }
 0x15a   : > { %1622 = vmatprep.subr.mxu0 %v533_v6  ;;  %1593 = vmatprep.subr.mxu1 %v773_v37  ;;  %v662_v3 = vld [vmem:[#allocation5 + $0xd80] sm:$0xff]  ;;  %v641_v6 = vld [vmem:[#allocation5 + $0xcd8] sm:$0xff]  ;;  %v819_v33 = vld [vmem:[#allocation5 + $0x1268] sm:$0xff] }
 0x15b   : > { %1832 = vst [vmem:[%s2407_s20 + $0x8] sm:$0xff] %v1119_v11  ;;  %1623 = vmatpush1.msra.mxu0 %v532_v9  ;;  %1594 = vmatpush2.msra.mxu1 %v772_v40  ;;  %v640_v9 = vld [vmem:[#allocation5 + $0xcd0] sm:$0xff]  ;;  %v246_v11 = vld [vmem:[#allocation5 + $0x80] sm:$0xff]  ;;  %v797_v37 = vld [vmem:[#allocation5 + $0x11b8] sm:$0xff] }
 0x15c   : > { %1624 = vmatprep.subr.mxu0 %v511_v12  ;;  %1595 = vmatprep.subr.mxu1 %v751_v43  ;;  %v619_v12 = vld [vmem:[#allocation5 + $0xc28] sm:$0xff]  ;;  %v818_v35 = vld [vmem:[#allocation5 + $0x1260] sm:$0xff]  ;;  %v796_v40 = vld [vmem:[#allocation5 + $0x11b0] sm:$0xff] }
 0x15d   : > { %1625 = vmatpush1.msra.mxu0 %v510_v14  ;;  %1596 = vmatpush2.msra.mxu1 %v750_v45  ;;  %v929_v14 = vld [vmem:[#allocation5 + $0x15d8] sm:$0xff]  ;;  %v775_v43 = vld [vmem:[#allocation5 + $0x1108] sm:$0xff]  ;;  %v774_v45 = vld [vmem:[#allocation5 + $0x1100] sm:$0xff] }
 0x15e   : > { %1626 = vmatprep.subr.mxu0 %v489_v16  ;;  %1597 = vmatprep.subr.mxu1 %v729_v47  ;;  %v928_v16 = vld [vmem:[#allocation5 + $0x15d0] sm:$0xff]  ;;  %v753_v47 = vld [vmem:[#allocation5 + $0x1058] sm:$0xff] }
 0x15f   : > { %1627 = vmatpush1.msra.mxu0 %v488_v18  ;;  %1598 = vmatpush2.msra.mxu1 %v728_v50  ;;  %v907_v18 = vld [vmem:[#allocation5 + $0x1528] sm:$0xff]  ;;  %v752_v50 = vld [vmem:[#allocation5 + $0x1050] sm:$0xff] }
 0x160   : > { %1628 = vmatprep.subr.mxu0 %v467_v20  ;;  %1599 = vmatprep.subr.mxu1 %v707_v54  ;;  %v906_v20 = vld [vmem:[#allocation5 + $0x1520] sm:$0xff]  ;;  %v731_v54 = vld [vmem:[#allocation5 + $0xfa8] sm:$0xff] }
 0x161   : > { %1629 = vmatpush1.msra.mxu0 %v466_v22  ;;  %1600 = vmatpush2.msra.mxu1 %v706_v58  ;;  %v579_v22 = vld [vmem:[#allocation5 + $0xae8] sm:$0xff]  ;;  %v730_v58 = vld [vmem:[#allocation5 + $0xfa0] sm:$0xff] }
 0x162   : > { %1630 = vmatprep.subr.mxu0 %v445_v24  ;;  %1601 = vmatprep.subr.mxu1 %v685_v60  ;;  %v1187_v4 = vpop.f32.mrf.mxu1  ;;  %v863_v24 = vld [vmem:[#allocation5 + $0x13c8] sm:$0xff]  ;;  %v709_v60 = vld [vmem:[#allocation5 + $0xef8] sm:$0xff] }
 0x163   : > { %1631 = vmatpush1.msra.mxu0 %v444_v27  ;;  %1602 = vmatpush2.msra.mxu1 %v684_v62  ;;  %v1188_v7 = vadd.f32 %v1187_v4, %v951_v61  ;;  %v578_v27 = vld [vmem:[#allocation5 + $0xae0] sm:$0xff]  ;;  %v425_v61 = vld [vmem:[#allocation5 + $0x618] sm:$0xff]  ;;  %v424_v62 = vld [vmem:[#allocation5 + $0x610] sm:$0xff] }
 0x164   : > { %1632 = vmatprep.subr.mxu0 %v423_v30  ;;  %1603 = vmatprep.subr.mxu1 %v663_v0  ;;  %v1189_v10 = vpop.f32.mrf.mxu1  ;;  %v557_v30 = vld [vmem:[#allocation5 + $0xa38] sm:$0xff]  ;;  %v403_v0 = vld [vmem:[#allocation5 + $0x568] sm:$0xff] }
 0x165   : > { %1633 = vmatpush1.msra.mxu0 %v422_v32  ;;  %1604 = vmatpush2.msra.mxu1 %v662_v3  ;;  %1833 = vst [vmem:[%s2407_s20 + $0x10] sm:$0xff] %v1188_v7  ;;  %v1190_v13 = vadd.f32 %v1189_v10, %v955_v1  ;;  %v556_v32 = vld [vmem:[#allocation5 + $0xa30] sm:$0xff]  ;;  %v686_v1 = vld [vmem:[#allocation5 + $0xe40] sm:$0xff]  ;;  %v665_v3 = vld [vmem:[#allocation5 + $0xd98] sm:$0xff] }
 0x166   : > { %1634 = vmatprep.subr.mxu0 %v401_v34  ;;  %1605 = vmatprep.subr.mxu1 %v641_v6  ;;  %v535_v34 = vld [vmem:[#allocation5 + $0x988] sm:$0xff]  ;;  %v381_v4 = vld [vmem:[#allocation5 + $0x4b8] sm:$0xff]  ;;  %v380_v6 = vld [vmem:[#allocation5 + $0x4b0] sm:$0xff] }
 0x167   : > { %1635 = vmatpush1.msra.mxu0 %v400_v36  ;;  %1606 = vmatpush2.msra.mxu1 %v640_v9  ;;  %1834 = vst [vmem:[%s2407_s20 + $0x18] sm:$0xff] %v1190_v13  ;;  %v534_v36 = vld [vmem:[#allocation5 + $0x980] sm:$0xff]  ;;  %v643_v7 = vld [vmem:[#allocation5 + $0xce8] sm:$0xff]  ;;  %v337_v13 = vld [vmem:[#allocation5 + $0x358] sm:$0xff] }
 0x168   : > { %1636 = vmatprep.subr.mxu0 %v379_v39  ;;  %1607 = vmatprep.subr.mxu1 %v619_v12  ;;  %v513_v39 = vld [vmem:[#allocation5 + $0x8d8] sm:$0xff]  ;;  %v642_v9 = vld [vmem:[#allocation5 + $0xce0] sm:$0xff]  ;;  %v2427_v12 = vsub.s32 4, %v2389_v41 }
 0x169   : > { %1637 = vmatpush1.msra.mxu0 %v378_v42  ;;  %1608 = vmatpush2.msra.mxu1 %v618_v15  ;;  %v512_v42 = vld [vmem:[#allocation5 + $0x8d0] sm:$0xff]  ;;  %v358_v10 = vld [vmem:[#allocation5 + $0x400] sm:$0xff] }
 0x16a   : > { %1638 = vmatprep.subr.mxu0 %v357_v44  ;;  %1609 = vmatprep.subr.mxu1 %v597_v17  ;;  %v491_v44 = vld [vmem:[#allocation5 + $0x828] sm:$0xff]  ;;  %v336_v15 = vld [vmem:[#allocation5 + $0x350] sm:$0xff]  ;;  %v2430_v17 = vsub.s32 5, %v2389_v41 }
 0x16b   : > { %1639 = vmatpush1.msra.mxu0 %v356_v46  ;;  %1610 = vmatpush2.msra.mxu1 %v596_v19  ;;  %v490_v46 = vld [vmem:[#allocation5 + $0x820] sm:$0xff] }
 0x16c   : > { %1640 = vmatprep.subr.mxu0 %v335_v48  ;;  %1611 = vmatprep.mubr.f32.mxu1 %v2371_v38  ;;  %v469_v48 = vld [vmem:[#allocation5 + $0x778] sm:$0xff]  ;;  %v598_v19 = vld [vmem:[#allocation5 + $0xb80] sm:$0xff] }
 0x16d   : > { %1641 = vmatpush1.msra.mxu0 %v334_v51  ;;  %1689 = vmatprep.subr.mxu1 %v579_v22  ;;  %v468_v51 = vld [vmem:[#allocation5 + $0x770] sm:$0xff]  ;;  %v581_v22 = vld [vmem:[#allocation5 + $0xaf8] sm:$0xff] }
 0x16e   : > { %1642 = vmatprep.subr.mxu0 %v313_v57  ;;  %1612 = vmatmul.mubr.f32.vlgmr.msra.gmra.mxu1 %v2375_v53  ;;  %v447_v57 = vld [vmem:[#allocation5 + $0x6c8] sm:$0xff] }
 0x16f   : > { %1643 = vmatpush1.msra.mxu0 %v312_v59  ;;  %1682 = vmatprep.mubr.f32.mxu0 %v2371_v38  ;;  %v446_v59 = vld [vmem:[#allocation5 + $0x6c0] sm:$0xff] }
 0x170   : > { %1644 = vmatprep.subr.mxu0 %v291_v29  ;;  %1690 = vmatpush1.msra.mxu1 %v578_v27  ;;  %v708_v29 = vld [vmem:[#allocation5 + $0xef0] sm:$0xff]  ;;  %v559_v27 = vld [vmem:[#allocation5 + $0xa48] sm:$0xff] }
 0x171   : > { %1645 = vmatpush1.msra.mxu0 %v290_v63  ;;  %1691 = vmatprep.subr.mxu1 %v557_v30  ;;  %v687_v63 = vld [vmem:[#allocation5 + $0xe48] sm:$0xff] }
 0x172   : > { %1646 = vmatprep.subr.mxu0 %v269_v2  ;;  %1692 = vmatpush1.msra.mxu1 %v556_v32  ;;  %v402_v2 = vld [vmem:[#allocation5 + $0x560] sm:$0xff]  ;;  %v271_v32 = vld [vmem:[#allocation5 + $0x148] sm:$0xff] }
 0x173   : > { %1647 = vmatpush1.msra.mxu0 %v268_v5  ;;  %1693 = vmatprep.subr.mxu1 %v535_v34  ;;  %v664_v5 = vld [vmem:[#allocation5 + $0xd90] sm:$0xff]  ;;  %v537_v34 = vld [vmem:[#allocation5 + $0x998] sm:$0xff] }
 0x174   : > { %1648 = vmatprep.subr.mxu0 %v247_v8  ;;  %1694 = vmatpush1.msra.mxu1 %v534_v36  ;;  %v359_v8 = vld [vmem:[#allocation5 + $0x408] sm:$0xff] }
 0x175   : > { %1649 = vmatpush1.msra.mxu0 %v246_v11  ;;  %1695 = vmatprep.subr.mxu1 %v513_v39  ;;  %v621_v11 = vld [vmem:[#allocation5 + $0xc38] sm:$0xff] }
 0x176   : > { %1650 = vmatprep.subr.mxu0 %v929_v14  ;;  %1696 = vmatpush1.msra.mxu1 %v512_v42  ;;  %v620_v14 = vld [vmem:[#allocation5 + $0xc30] sm:$0xff]  ;;  %v249_v39 = vld [vmem:[#allocation5 + $0x98] sm:$0xff]  ;;  %v515_v42 = vld [vmem:[#allocation5 + $0x8e8] sm:$0xff] }
 0x177   : > { %1651 = vmatpush2.msra.mxu0 %v928_v16  ;;  %1697 = vmatprep.subr.mxu1 %v491_v44  ;;  %v599_v16 = vld [vmem:[#allocation5 + $0xb88] sm:$0xff]  ;;  %v514_v44 = vld [vmem:[#allocation5 + $0x8e0] sm:$0xff] }
 0x178   : > { %1652 = vmatprep.subr.mxu0 %v907_v18  ;;  %1698 = vmatpush1.msra.mxu1 %v490_v46  ;;  %v315_v18 = vld [vmem:[#allocation5 + $0x2a8] sm:$0xff]  ;;  %v493_v46 = vld [vmem:[#allocation5 + $0x838] sm:$0xff] }
 0x179   : > { %1653 = vmatpush2.msra.mxu0 %v906_v20  ;;  %1699 = vmatprep.subr.mxu1 %v469_v48  ;;  %v314_v20 = vld [vmem:[#allocation5 + $0x2a0] sm:$0xff]  ;;  %v492_v48 = vld [vmem:[#allocation5 + $0x830] sm:$0xff] }
 0x17a   : > { %1654 = vmatprep.subr.mxu0 %v885_v21  ;;  %1700 = vmatpush1.msra.mxu1 %v468_v51  ;;  %v959_v21 = vrot.slane %v2394_v52, %v2427_v12  ;;  %v471_v51 = vld [vmem:[#allocation5 + $0x788] sm:$0xff] }
 0x17b   : > { %1655 = vmatpush2.msra.mxu0 %v884_v23  ;;  %1701 = vmatprep.subr.mxu1 %v447_v57  ;;  %v580_v23 = vld [vmem:[#allocation5 + $0xaf0] sm:$0xff]  ;;  %v470_v57 = vld [vmem:[#allocation5 + $0x780] sm:$0xff] }
 0x17c   : > { %1656 = vmatprep.subr.mxu0 %v863_v24  ;;  %1702 = vmatpush1.msra.mxu1 %v446_v59  ;;  %v293_v24 = vld [vmem:[#allocation5 + $0x1f8] sm:$0xff] }
 0x17d   : > { %1657 = vmatpush2.msra.mxu0 %v862_v25  ;;  %1703 = vmatprep.subr.mxu1 %v425_v61  ;;  %v963_v25 = vrot.slane %v2394_v52, %v2430_v17  ;;  %v449_v59 = vld [vmem:[#allocation5 + $0x6d8] sm:$0xff]  ;;  %v448_v61 = vld [vmem:[#allocation5 + $0x6d0] sm:$0xff] }
 0x17e   : > { %1658 = vmatprep.subr.mxu0 %v841_v28  ;;  %1704 = vmatpush1.msra.mxu1 %v424_v62  ;;  %v292_v28 = vld [vmem:[#allocation5 + $0x1f0] sm:$0xff]  ;;  %v427_v62 = vld [vmem:[#allocation5 + $0x628] sm:$0xff] }
 0x17f   : > { %1659 = vmatpush2.msra.mxu0 %v840_v31  ;;  %1705 = vmatprep.subr.mxu1 %v403_v0  ;;  %v558_v31 = vld [vmem:[#allocation5 + $0xa40] sm:$0xff] }
 0x180   : > { %1660 = vmatprep.subr.mxu0 %v819_v33  ;;  %1706 = vmatpush1.msra.mxu1 %v402_v2  ;;  %v426_v0 = vld [vmem:[#allocation5 + $0x620] sm:$0xff]  ;;  %v405_v2 = vld [vmem:[#allocation5 + $0x578] sm:$0xff] }
 0x181   : > { %1661 = vmatpush2.msra.mxu0 %v818_v35  ;;  %1707 = vmatprep.subr.mxu1 %v381_v4  ;;  %v270_v35 = vld [vmem:[#allocation5 + $0x140] sm:$0xff]  ;;  %v404_v4 = vld [vmem:[#allocation5 + $0x570] sm:$0xff] }
 0x182   : > { %1662 = vmatprep.subr.mxu0 %v797_v37  ;;  %1708 = vmatpush1.msra.mxu1 %v380_v6  ;;  %v536_v37 = vld [vmem:[#allocation5 + $0x990] sm:$0xff]  ;;  %v383_v6 = vld [vmem:[#allocation5 + $0x4c8] sm:$0xff] }
 0x183   : > { %1663 = vmatpush2.msra.mxu0 %v796_v40  ;;  %1709 = vmatprep.subr.mxu1 %v359_v8  ;;  %v382_v8 = vld [vmem:[#allocation5 + $0x4c0] sm:$0xff] }
 0x184   : > { %1664 = vmatprep.subr.mxu0 %v775_v43  ;;  %1710 = vmatpush1.msra.mxu1 %v358_v10  ;;  %v248_v43 = vld [vmem:[#allocation5 + $0x90] sm:$0xff]  ;;  %v361_v10 = vld [vmem:[#allocation5 + $0x418] sm:$0xff] }
 0x185   : > { %1665 = vmatpush2.msra.mxu0 %v774_v45  ;;  %1711 = vmatprep.subr.mxu1 %v337_v13  ;;  %v931_v45 = vld [vmem:[#allocation5 + $0x15e8] sm:$0xff]  ;;  %v360_v13 = vld [vmem:[#allocation5 + $0x410] sm:$0xff] }
 0x186   : > { %1666 = vmatprep.subr.mxu0 %v753_v47  ;;  %1712 = vmatpush1.msra.mxu1 %v336_v15  ;;  %v930_v47 = vld [vmem:[#allocation5 + $0x15e0] sm:$0xff]  ;;  %v339_v15 = vld [vmem:[#allocation5 + $0x368] sm:$0xff] }
 0x187   : > { %1667 = vmatpush2.msra.mxu0 %v752_v50  ;;  %1713 = vmatprep.subr.mxu1 %v315_v18  ;;  %v909_v50 = vld [vmem:[#allocation5 + $0x1538] sm:$0xff]  ;;  %v338_v18 = vld [vmem:[#allocation5 + $0x360] sm:$0xff] }
 0x188   : > { %1668 = vmatprep.subr.mxu0 %v731_v54  ;;  %1714 = vmatpush1.msra.mxu1 %v314_v20  ;;  %v908_v54 = vld [vmem:[#allocation5 + $0x1530] sm:$0xff]  ;;  %v317_v20 = vld [vmem:[#allocation5 + $0x2b8] sm:$0xff] }
 0x189   : > { %1669 = vmatpush2.msra.mxu0 %v730_v58  ;;  %1715 = vmatprep.subr.mxu1 %v293_v24  ;;  %v887_v58 = vld [vmem:[#allocation5 + $0x1488] sm:$0xff]  ;;  %v966_v24 = vsub.s32 6, %v2389_v41 }
 0x18a   : > { %1670 = vmatprep.subr.mxu0 %v709_v60  ;;  %1716 = vmatpush1.msra.mxu1 %v292_v28  ;;  %v886_v60 = vld [vmem:[#allocation5 + $0x1480] sm:$0xff] }
 0x18b   : > { %1671 = vmatpush2.msra.mxu0 %v708_v29  ;;  %1717 = vmatprep.subr.mxu1 %v271_v32  ;;  %v865_v29 = vld [vmem:[#allocation5 + $0x13d8] sm:$0xff]  ;;  %v294_v28 = vld [vmem:[#allocation5 + $0x200] sm:$0xff] }
 0x18c   : > { %1672 = vmatprep.subr.mxu0 %v687_v63  ;;  %1718 = vmatpush1.msra.mxu1 %v270_v35  ;;  %v864_v63 = vld [vmem:[#allocation5 + $0x13d0] sm:$0xff]  ;;  %v273_v32 = vld [vmem:[#allocation5 + $0x158] sm:$0xff] }
 0x18d   : > { %1673 = vmatpush2.msra.mxu0 %v686_v1  ;;  %1719 = vmatprep.subr.mxu1 %v249_v39  ;;  %v843_v1 = vld [vmem:[#allocation5 + $0x1328] sm:$0xff]  ;;  %v689_v35 = vld [vmem:[#allocation5 + $0xe58] sm:$0xff]  ;;  %v688_v39 = vld [vmem:[#allocation5 + $0xe50] sm:$0xff] }
 0x18e   : > { %1674 = vmatprep.subr.mxu0 %v665_v3  ;;  %1720 = vmatpush1.msra.mxu1 %v248_v43  ;;  %v842_v3 = vld [vmem:[#allocation5 + $0x1320] sm:$0xff] }
 0x18f   : > { %1675 = vmatpush2.msra.mxu0 %v664_v5  ;;  %1721 = vmatprep.subr.mxu1 %v931_v45  ;;  %v821_v5 = vld [vmem:[#allocation5 + $0x1278] sm:$0xff]  ;;  %v666_v45 = vld [vmem:[#allocation5 + $0xda0] sm:$0xff] }
 0x190   : > { %1676 = vmatprep.subr.mxu0 %v643_v7  ;;  %1722 = vmatpush2.msra.mxu1 %v930_v47  ;;  %v820_v7 = vld [vmem:[#allocation5 + $0x1270] sm:$0xff] }
 0x191   : > { %1677 = vmatpush2.msra.mxu0 %v642_v9  ;;  %1723 = vmatprep.subr.mxu1 %v909_v50  ;;  %v799_v9 = vld [vmem:[#allocation5 + $0x11c8] sm:$0xff]  ;;  %v932_v47 = vld [vmem:[#allocation5 + $0x15f0] sm:$0xff] }
 0x192   : > { %1678 = vmatprep.subr.mxu0 %v621_v11  ;;  %1724 = vmatpush2.msra.mxu1 %v908_v54  ;;  %v798_v11 = vld [vmem:[#allocation5 + $0x11c0] sm:$0xff]  ;;  %v644_v54 = vld [vmem:[#allocation5 + $0xcf0] sm:$0xff] }
 0x193   : > { %1679 = vmatpush2.msra.mxu0 %v620_v14  ;;  %1725 = vmatprep.subr.mxu1 %v887_v58  ;;  %v777_v14 = vld [vmem:[#allocation5 + $0x1118] sm:$0xff]  ;;  %v910_v58 = vld [vmem:[#allocation5 + $0x1540] sm:$0xff] }
 0x194   : > { %1680 = vmatprep.subr.mxu0 %v599_v16  ;;  %1726 = vmatpush2.msra.mxu1 %v886_v60  ;;  %v776_v16 = vld [vmem:[#allocation5 + $0x1110] sm:$0xff]  ;;  %v889_v60 = vld [vmem:[#allocation5 + $0x1498] sm:$0xff] }
 0x195   : > { %1681 = vmatpush2.msra.mxu0 %v598_v19  ;;  %1727 = vmatprep.subr.mxu1 %v865_v29  ;;  %v755_v19 = vld [vmem:[#allocation5 + $0x1068] sm:$0xff]  ;;  %v888_v29 = vld [vmem:[#allocation5 + $0x1490] sm:$0xff] }
 0x196   : > { %v1258_v30 = vpop.f32.mrf.mxu0  ;;  %1683 = vmatmul.mubr.f32.vlgmr.msra.gmra.mxu0 %v2375_v53  ;;  %1760 = vmatprep.subr.mxu0 %v581_v22  ;;  %v316_v22 = vld [vmem:[#allocation5 + $0x2b0] sm:$0xff] }
 0x197   : > { %v1259_v33 = vadd.f32 %v1258_v30, %v959_v21  ;;  %1761 = vmatpush1.msra.mxu0 %v580_v23  ;;  %1728 = vmatpush2.msra.mxu1 %v864_v63  ;;  %v754_v21 = vld [vmem:[#allocation5 + $0x1060] sm:$0xff]  ;;  %v733_v23 = vld [vmem:[#allocation5 + $0xfb8] sm:$0xff]  ;;  %v711_v30 = vld [vmem:[#allocation5 + $0xf08] sm:$0xff] }
 0x198   : > { %v1260_v36 = vpop.f32.mrf.mxu0  ;;  %1762 = vmatprep.subr.mxu0 %v559_v27  ;;  %1729 = vmatprep.subr.mxu1 %v843_v1  ;;  %v732_v27 = vld [vmem:[#allocation5 + $0xfb0] sm:$0xff]  ;;  %v867_v63 = vld [vmem:[#allocation5 + $0x13e8] sm:$0xff]  ;;  %v866_v1 = vld [vmem:[#allocation5 + $0x13e0] sm:$0xff] }
 0x199   : > { %1835 = vst [vmem:[%s2407_s20 + $0x20] sm:$0xff] %v1259_v33  ;;  %v1261_v40 = vadd.f32 %v1260_v36, %v963_v25  ;;  %1763 = vmatpush1.msra.mxu0 %v558_v31  ;;  %1730 = vmatpush2.msra.mxu1 %v842_v3  ;;  %v295_v25 = vld [vmem:[#allocation5 + $0x208] sm:$0xff]  ;;  %v970_v31 = vsub.s32 7, %v2389_v41  ;;  %v710_v33 = vld [vmem:[#allocation5 + $0xf00] sm:$0xff]  ;;  %v967_v36 = vrot.slane %v2394_v52, %v966_v24  ;;  %v844_v3 = vld [vmem:[#allocation5 + $0x1330] sm:$0xff] }
 0x19a   : > { %1764 = vmatprep.subr.mxu0 %v537_v34  ;;  %1731 = vmatprep.subr.mxu1 %v821_v5  ;;  %v272_v34 = vld [vmem:[#allocation5 + $0x150] sm:$0xff]  ;;  %v822_v5 = vld [vmem:[#allocation5 + $0x1280] sm:$0xff] }
 0x19b   : > { %1836 = vst [vmem:[%s2407_s20 + $0x28] sm:$0xff] %v1261_v40  ;;  %1765 = vmatpush1.msra.mxu0 %v536_v37  ;;  %1732 = vmatpush2.msra.mxu1 %v820_v7  ;;  %v251_v37 = vld [vmem:[#allocation5 + $0xa8] sm:$0xff]  ;;  %v250_v40 = vld [vmem:[#allocation5 + $0xa0] sm:$0xff]  ;;  %v971_v43 = vrot.slane %v2394_v52, %v970_v31  ;;  %v800_v7 = vld [vmem:[#allocation5 + $0x11d0] sm:$0xff] }
 0x19c   : > { %1766 = vmatprep.subr.mxu0 %v515_v42  ;;  %1733 = vmatprep.subr.mxu1 %v799_v9  ;;  %v667_v42 = vld [vmem:[#allocation5 + $0xda8] sm:$0xff]  ;;  %v778_v9 = vld [vmem:[#allocation5 + $0x1120] sm:$0xff] }
 0x19d   : > { %1767 = vmatpush1.msra.mxu0 %v514_v44  ;;  %1734 = vmatpush2.msra.mxu1 %v798_v11  ;;  %v933_v44 = vld [vmem:[#allocation5 + $0x15f8] sm:$0xff]  ;;  %v623_v52 = vld [vmem:[#allocation5 + $0xc48] sm:$0xff]  ;;  %v756_v11 = vld [vmem:[#allocation5 + $0x1070] sm:$0xff] }
 0x19e   : > { %1768 = vmatprep.subr.mxu0 %v493_v46  ;;  %1735 = vmatprep.subr.mxu1 %v777_v14  ;;  %v734_v14 = vld [vmem:[#allocation5 + $0xfc0] sm:$0xff] }
 0x19f   : > { %1769 = vmatpush1.msra.mxu0 %v492_v48  ;;  %1736 = vmatpush2.msra.mxu1 %v776_v16  ;;  %v645_v48 = vld [vmem:[#allocation5 + $0xcf8] sm:$0xff]  ;;  %v712_v16 = vld [vmem:[#allocation5 + $0xf10] sm:$0xff] }
 0x1a0   : > { %1770 = vmatprep.subr.mxu0 %v471_v51  ;;  %1737 = vmatprep.subr.mxu1 %v755_v19  ;;  %v911_v51 = vld [vmem:[#allocation5 + $0x1548] sm:$0xff]  ;;  %v669_v19 = vld [vmem:[#allocation5 + $0xdb8] sm:$0xff] }
 0x1a1   : > { %1771 = vmatpush1.msra.mxu0 %v470_v57  ;;  %1738 = vmatpush2.msra.mxu1 %v754_v21  ;;  %v647_v21 = vld [vmem:[#allocation5 + $0xd08] sm:$0xff] }
 0x1a2   : > { %1772 = vmatprep.subr.mxu0 %v449_v59  ;;  %1739 = vmatprep.subr.mxu1 %v733_v23  ;;  %v625_v23 = vld [vmem:[#allocation5 + $0xc58] sm:$0xff] }
 0x1a3   : > { %1773 = vmatpush1.msra.mxu0 %v448_v61  ;;  %1740 = vmatpush2.msra.mxu1 %v732_v27  ;;  %v622_v61 = vld [vmem:[#allocation5 + $0xc40] sm:$0xff]  ;;  %v935_v27 = vld [vmem:[#allocation7 + $0x8] sm:$0xff] }
 0x1a4   : > { %1774 = vmatprep.subr.mxu0 %v427_v62  ;;  %1741 = vmatprep.subr.mxu1 %v711_v30  ;;  %v601_v62 = vld [vmem:[#allocation5 + $0xb98] sm:$0xff]  ;;  %v602_v30 = vld [vmem:[#allocation5 + $0xba0] sm:$0xff] }
 0x1a5   : > { %1775 = vmatpush1.msra.mxu0 %v426_v0  ;;  %1742 = vmatpush2.msra.mxu1 %v710_v33  ;;  %v600_v0 = vld [vmem:[#allocation5 + $0xb90] sm:$0xff]  ;;  %v979_v33 = vrot.slane %v935_v27, %v2397_v56 }
 0x1a6   : > { %1776 = vmatprep.subr.mxu0 %v405_v2  ;;  %1743 = vmatprep.subr.mxu1 %v689_v35  ;;  %v1329_v46 = vpop.f32.mrf.mxu1  ;;  %v845_v2 = vld [vmem:[#allocation5 + $0x1338] sm:$0xff] }
 0x1a7   : > { %1777 = vmatpush1.msra.mxu0 %v404_v4  ;;  %1744 = vmatpush2.msra.mxu1 %v688_v39  ;;  %v1330_v50 = vadd.f32 %v1329_v46, %v967_v36  ;;  %v823_v4 = vld [vmem:[#allocation5 + $0x1288] sm:$0xff]  ;;  %v983_v39 = vrot.slane %v935_v27, %v2412_v26  ;;  %v995_v46 = vrot.slane %v935_v27, %v2430_v17 }
 0x1a8   : > { %1778 = vmatprep.subr.mxu0 %v383_v6  ;;  %1745 = vmatprep.subr.mxu1 %v667_v42  ;;  %v1331_v57 = vpop.f32.mrf.mxu1  ;;  %v801_v6 = vld [vmem:[#allocation5 + $0x11d8] sm:$0xff] }
 0x1a9   : > { %1779 = vmatpush1.msra.mxu0 %v382_v8  ;;  %1746 = vmatpush2.msra.mxu1 %v666_v45  ;;  %1837 = vst [vmem:[%s2407_s20 + $0x30] sm:$0xff] %v1330_v50  ;;  %v1332_v59 = vadd.f32 %v1331_v57, %v971_v43  ;;  %v779_v8 = vld [vmem:[#allocation5 + $0x1128] sm:$0xff]  ;;  %v1003_v57 = vrot.slane %v935_v27, %v970_v31 }
 0x1aa   : > { %1780 = vmatprep.subr.mxu0 %v361_v10  ;;  %1747 = vmatprep.subr.mxu1 %v645_v48  ;;  %v757_v10 = vld [vmem:[#allocation5 + $0x1078] sm:$0xff] }
 0x1ab   : > { %1781 = vmatpush1.msra.mxu0 %v360_v13  ;;  %1748 = vmatpush2.msra.mxu1 %v644_v54  ;;  %1838 = vst [vmem:[%s2407_s20 + $0x38] sm:$0xff] %v1332_v59  ;;  %v735_v13 = vld [vmem:[#allocation5 + $0xfc8] sm:$0xff]  ;;  %v999_v54 = vrot.slane %v935_v27, %v966_v24 }
 0x1ac   : > { %1782 = vmatprep.subr.mxu0 %v339_v15  ;;  %1749 = vmatprep.subr.mxu1 %v623_v52  ;;  %v713_v15 = vld [vmem:[#allocation5 + $0xf18] sm:$0xff] }
 0x1ad   : > { %1783 = vmatpush1.msra.mxu0 %v338_v18  ;;  %1750 = vmatpush2.msra.mxu1 %v622_v61  ;;  %v690_v18 = vld [vmem:[#allocation5 + $0xe60] sm:$0xff]  ;;  %v936_v61 = vld [vmem:[#allocation7 + $0x10] sm:$0x3f] }
 0x1ae   : > { %1784 = vmatprep.subr.mxu0 %v317_v20  ;;  %1751 = vmatprep.subr.mxu1 %v601_v62  ;;  %v668_v20 = vld [vmem:[#allocation5 + $0xdb0] sm:$0xff]  ;;  %v1011_v62 = vrot.slane %v936_v61, %v2397_v56  ;;  %v1015_v31 = vrot.slane %v936_v61, %v2412_v26  ;;  %v1023_v56 = vrot.slane %v936_v61, %v2427_v12 }
 0x1af   : > { %1785 = vmatpush1.msra.mxu0 %v316_v22  ;;  %1752 = vmatpush2.msra.mxu1 %v600_v0  ;;  %v646_v22 = vld [vmem:[#allocation5 + $0xd00] sm:$0xff] }
 0x1b0   : > { %1786 = vmatprep.subr.mxu0 %v295_v25  ;;  %1753 = vmatprep.mubr.f32.mxu1 %v2371_v38  ;;  %v624_v25 = vld [vmem:[#allocation5 + $0xc50] sm:$0xff] }
 0x1b1   : > { %1787 = vmatpush1.msra.mxu0 %v294_v28  ;;  %1754 = vmatmul.mubr.f32.vlgmr.msra.gmra.mxu1 %v2375_v53  ;;  %v603_v28 = vld [vmem:[#allocation5 + $0xba8] sm:$0xff] }
 0x1b2   : > { %1788 = vmatprep.subr.mxu0 %v273_v32  ;;  %1824 = vmatprep.mubr.f32.mxu0 %v2371_v38  ;;  %v691_v38 = vld [vmem:[#allocation5 + $0xe68] sm:$0xff]  ;;  %v975_v32 = vrot.slane %v935_v27, %v2392_v49 }
 0x1b3   : > { %1789 = vmatpush1.msra.mxu0 %v272_v34 }
 0x1b4   : > { %1790 = vmatprep.subr.mxu0 %v251_v37 }
 0x1b5   : > { %1791 = vmatpush1.msra.mxu0 %v250_v40  ;;  %v987_v40 = vrot.slane %v935_v27, %v2415_v55 }
 0x1b6   : > { %1792 = vmatprep.subr.mxu0 %v933_v44 }
 0x1b7   : > { %1793 = vmatpush2.msra.mxu0 %v932_v47 }
 0x1b8   : > { %1794 = vmatprep.subr.mxu0 %v911_v51 }
 0x1b9   : > { %1795 = vmatpush2.msra.mxu0 %v910_v58 }
 0x1ba   : > { %1796 = vmatprep.subr.mxu0 %v889_v60 }
 0x1bb   : > { %1797 = vmatpush2.msra.mxu0 %v888_v29  ;;  %v1007_v29 = vrot.slane %v936_v61, %v2392_v49 }
 0x1bc   : > { %1798 = vmatprep.subr.mxu0 %v867_v63 }
 0x1bd   : > { %1799 = vmatpush2.msra.mxu0 %v866_v1  ;;  %v1019_v1 = vrot.slane %v936_v61, %v2415_v55 }
 0x1be   : > { %1800 = vmatprep.subr.mxu0 %v845_v2 }
 0x1bf   : > { %1801 = vmatpush2.msra.mxu0 %v844_v3 }
 0x1c0   : > { %1802 = vmatprep.subr.mxu0 %v823_v4 }
 0x1c1   : > { %1803 = vmatpush2.msra.mxu0 %v822_v5  ;;  %v1027_v5 = vrot.slane %v936_v61, %v2430_v17 }
 0x1c2   : > { %1804 = vmatprep.subr.mxu0 %v801_v6 }
 0x1c3   : > { %1805 = vmatpush2.msra.mxu0 %v800_v7 }
 0x1c4   : > { %1806 = vmatprep.subr.mxu0 %v779_v8 }
 0x1c5   : > { %1807 = vmatpush2.msra.mxu0 %v778_v9 }
 0x1c6   : > { %1808 = vmatprep.subr.mxu0 %v757_v10 }
 0x1c7   : > { %1809 = vmatpush2.msra.mxu0 %v756_v11 }
 0x1c8   : > { %1810 = vmatprep.subr.mxu0 %v735_v13 }
 0x1c9   : > { %1811 = vmatpush2.msra.mxu0 %v734_v14 }
 0x1ca   : > { %1812 = vmatprep.subr.mxu0 %v713_v15 }
 0x1cb   : > { %1813 = vmatpush2.msra.mxu0 %v712_v16 }
 0x1cc   : > { %1814 = vmatprep.subr.mxu0 %v691_v38 }
 0x1cd   : > { %1815 = vmatpush2.msra.mxu0 %v690_v18 }
 0x1ce   : > { %1816 = vmatprep.subr.mxu0 %v669_v19 }
 0x1cf   : > { %1817 = vmatpush2.msra.mxu0 %v668_v20 }
 0x1d0   : > { %1818 = vmatprep.subr.mxu0 %v647_v21 }
 0x1d1   : > { %1819 = vmatpush2.msra.mxu0 %v646_v22 }
 0x1d2   : > { %1820 = vmatprep.subr.mxu0 %v625_v23 }
 0x1d3   : > { %1821 = vmatpush2.msra.mxu0 %v624_v25 }
 0x1d4   : > { %1822 = vmatprep.subr.mxu0 %v603_v28 }
 0x1d5   : > { %1823 = vmatpush2.msra.mxu0 %v602_v30 }
 0x1d6   : > { %v1400_v34 = vpop.f32.mrf.mxu0  ;;  %1825 = vmatmul.mubr.f32.vlgmr.msra.gmra.mxu0 %v2375_v53  ;;  %v991_v53 = vrot.slane %v935_v27, %v2427_v12 }
 0x1d7   : > { %v1401_v35 = vadd.f32 %v1400_v34, %v975_v32 }
 0x1d8   : > { %v1402_v36 = vpop.f32.mrf.mxu0 }
 0x1d9   : > { %1839 = vst [vmem:[%s2407_s20 + $0x40] sm:$0xff] %v1401_v35  ;;  %v1403_v37 = vadd.f32 %v1402_v36, %v979_v33 }
 0x1db   : > { %1840 = vst [vmem:[%s2407_s20 + $0x48] sm:$0xff] %v1403_v37 }
 0x1ea   : > { %v1471_v42 = vpop.f32.mrf.mxu1 }
 0x1eb   : > { %v1472_v43 = vadd.f32 %v1471_v42, %v983_v39 }
 0x1ec   : > { %v1473_v44 = vpop.f32.mrf.mxu1 }
 0x1ed   : > { %1841 = vst [vmem:[%s2407_s20 + $0x50] sm:$0xff] %v1472_v43  ;;  %v1474_v45 = vadd.f32 %v1473_v44, %v987_v40 }
 0x1ef   : > { %1842 = vst [vmem:[%s2407_s20 + $0x58] sm:$0xff] %v1474_v45 }
 0x216   : > { %v1542_v47 = vpop.f32.mrf.mxu0 }
 0x217   : > { %v1543_v48 = vadd.f32 %v1542_v47, %v991_v53 }
 0x218   : > { %v1544_v50 = vpop.f32.mrf.mxu0 }
 0x219   : > { %1843 = vst [vmem:[%s2407_s20 + $0x60] sm:$0xff] %v1543_v48  ;;  %v1545_v51 = vadd.f32 %v1544_v50, %v995_v46 }
 0x21b   : > { %1844 = vst [vmem:[%s2407_s20 + $0x68] sm:$0xff] %v1545_v51 }
 0x22e   : > { %v1613_v58 = vpop.f32.mrf.mxu1 }
 0x22f   : > { %v1614_v52 = vadd.f32 %v1613_v58, %v999_v54 }
 0x230   : > { %v1615_v59 = vpop.f32.mrf.mxu1 }
 0x231   : > { %1845 = vst [vmem:[%s2407_s20 + $0x70] sm:$0xff] %v1614_v52  ;;  %v1616_v60 = vadd.f32 %v1615_v59, %v1003_v57 }
 0x233   : > { %1846 = vst [vmem:[%s2407_s20 + $0x78] sm:$0xff] %v1616_v60 }
 0x256   : > { %v1684_v63 = vpop.f32.mrf.mxu0 }
 0x257   : > { %v1685_v24 = vadd.f32 %v1684_v63, %v1007_v29 }
 0x258   : > { %v1686_v0 = vpop.f32.mrf.mxu0 }
 0x259   : > { %1847 = vst [vmem:[%s2407_s20 + $0x80] sm:$0xff] %v1685_v24  ;;  %v1687_v41 = vadd.f32 %v1686_v0, %v1011_v62 }
 0x25b   : > { %1848 = vst [vmem:[%s2407_s20 + $0x88] sm:$0xff] %v1687_v41 }
 0x271   : > { %v1755_v2 = vpop.f32.mrf.mxu1 }
 0x272   : > { %v1756_v3 = vadd.f32 %v1755_v2, %v1015_v31 }
 0x273   : > { %v1757_v4 = vpop.f32.mrf.mxu1 }
 0x274   : > { %1849 = vst [vmem:[%s2407_s20 + $0x90] sm:$0xff] %v1756_v3  ;;  %v1758_v49 = vadd.f32 %v1757_v4, %v1019_v1 }
 0x276   : > { %1850 = vst [vmem:[%s2407_s20 + $0x98] sm:$0xff] %v1758_v49 }
 0x296   : > { %v1826_v6 = vpop.f32.mrf.mxu0 }
 0x297   : > { %v1827_v7 = vadd.f32 %v1826_v6, %v1023_v56 }
 0x298   : > { %v1828_v26 = vpop.f32.mrf.mxu0 }
 0x299   : > { %1851 = vst [vmem:[%s2407_s20 + $0xa0] sm:$0xff] %v1827_v7  ;;  %v1829_v55 = vadd.f32 %v1828_v26, %v1027_v5 }
 0x29b   : > { %1852 = vst [vmem:[%s2407_s20 + $0xa8] sm:$0xff] %v1829_v55 }
 0x29c   : > { %2147 = shalt.err (!%p2144_p9)
}
 0x29d   : > { %s2148_s17 = scalar_lea.hbm %s1866_s5, 2816  ;;  %s2152_s24 = scalar_lea.hbm %s2522_s3, 5632 }
 0x29e   : > { %p2149_p13 = scmp.ne.s32.totalorder %s1866_s5, %s2148_s17  ;;  %p2153_p0 = scmp.lt.s32.totalorder %s1866_s5, %s2522_s3 }
 0x29f   : > { %p2154_p4 = scmp.lt.s32.totalorder %s2152_s24, %s2148_s17 }
 0x2a0   : > { %p2150_p5 = pnand %p2149_p13, %p2538_p11 }
 0x2a1   : > { %p2155_p8 = por %p2154_p4, %p2153_p0 }
 0x2a2   : > { %p2151_p10 = pneg %p2150_p5 }
 0x2a4   : > { %p2156_p3 = pnand %p2155_p8, %p2151_p10 }
 0x2a6   : > { %2159 = shalt.err (!%p2156_p3)
}
 0x2a7   : > { %1987 = dma.vmem_to_hbm [thread:$0]  (%p2538_p11), %s1869_s27, 2816, %s1866_s5, %s1854_s6  }
 0x2a8 PF: > { %s1880_s4 = sand.u32 1, %s2190_s12   ;;  %p2539_p1 = scmp.ne.s32.totalorder %s2528_s19, 0 }
 0x2a9   : > { %p2540_p2 = scmp.ge.s32.totalorder %s2202_s15, 2  ;;  %s1881_s18 = scalar_lea.sflag [#allocation4], %s1880_s4 }
 0x2ab   : > { %p2001_p6 = pnand %p2540_p2, %p2539_p1 }
 0x2ad   : > { %p2002_p12 = pneg %p2001_p6 }
 0x2af   : > { %2185 = dma.done.wait (%p2002_p12), %s1881_s18, 2816  }
 0x2b0   : > { %2187 = vsyncadd (%p2002_p12), %s1881_s18, 4294964480  ;;  %p17_p7 = scmp.ge.s32.totalorder %s2302_s7, 4   ;;  %s2541_s12 = smov %s2194_s13 }
 0x2b1   : > { %s2542_s13 = smov %s2198_s14  ;;  %s2543_s14 = smov %s2318_s11 }
 0x2b2   : > { %s2544_s15 = smov %s2302_s7  ;;  %19 = sbr.rel (!%p17_p7) target bundleno = 6 (0x6), region = 85 }
 0x2b7   :  { %1886 = vsyncpa [#allocation3], 1 }
 0x2b8   :  { %1888 = vsyncpa [#allocation3 + $0x1], 1 }
 0x2b9   :  { %1889 = vsyncpa [#allocation6], 1 }
 0x2ba   :  { %1890 = vsyncpa [#allocation4], 1 }
 0x2bb   :  { %1892 = vsyncpa [#allocation4 + $0x1], 1 }

</bundles_post_ra>
